<compile_context>
chip_gen: v7x
topology: tpu7x:2x2x1
jax: 0.10.0
libtpu: 0.0.40
codegen_flags: <defaults>
</compile_context>

<pallas_src>
import functools

import jax
import jax.numpy as jnp
from jax import lax
from jax.experimental import pallas as pl
from jax.experimental.pallas import tpu as pltpu


# --------------------------------------------------------------------------- #
# Pallas kernel: LinearScaledDotProductAttention core                          #
# --------------------------------------------------------------------------- #
def _linear_attn_kernel(q_ref, k_ref, v_ref, o_ref, ctx_ref):
    """Grid = (batch_blocks, m_tiles); m is innermost ("arbitrary").

    Block shapes:
      q_ref: (bb, tm, D)   k_ref: (bb, N, D)   v_ref: (bb, N, Dv)
      o_ref: (bb, tm, Dv)  ctx_ref (resident scratch): (bb, D, Dv) in MXU dtype.
    """
    mxu_dtype = q_ref.dtype  # feed the MXU at input precision (bf16 runs full rate)

    # ctx = softmax(K, dim=-2)^T @ V is independent of the M tile: build it once
    # per batch block (first M tile) into the resident VMEM scratch.
    @pl.when(pl.program_id(1) == 0)
    def _():
        k = k_ref[...].astype(jnp.float32)                  # (bb, N, D)
        k_max = jnp.max(k, axis=1, keepdims=True)           # (bb, 1, D)
        k_exp = jnp.exp(k - k_max)                          # (bb, N, D) f32
        k_den = jnp.sum(k_exp, axis=1)                      # (bb, D)
        # Transpose-free batched exp(K)^T @ V: contract over N (axis 1 of both).
        ctx = lax.dot_general(
            k_exp.astype(mxu_dtype), v_ref[...],
            dimension_numbers=(((1,), (1,)), ((0,), (0,))),
            preferred_element_type=jnp.float32)             # (bb, D, Dv) f32
        # Softmax denominator folded in as a post-matmul (bb, D, 1) row scale
        # (instead of a (bb, N, D) pre-matmul multiply).  Exact reciprocal: after
        # folding the tensor is tiny, so the EUP-vs-VPU slot no longer matters.
        ctx = ctx * pl.reciprocal(k_den)[:, :, None]
        ctx_ref[...] = ctx.astype(ctx_ref.dtype)

    # Per-M-tile work: softmax(Q, dim=-1) @ ctx, denominator folded post-matmul.
    q = q_ref[...].astype(jnp.float32)                      # (bb, tm, D)
    q_max = jnp.max(q, axis=-1, keepdims=True)
    q_exp = jnp.exp(q - q_max)
    q_den = jnp.sum(q_exp, axis=-1, keepdims=True)          # (bb, tm, 1)
    out = lax.dot_general(
        q_exp.astype(mxu_dtype), ctx_ref[...],
        dimension_numbers=(((2,), (1,)), ((0,), (0,))),
        preferred_element_type=jnp.float32)                  # (bb, tm, Dv) f32
    out = out * pl.reciprocal(q_den)                          # (tm,1) scale, not (tm,D)
    o_ref[...] = out.astype(o_ref.dtype)


# --------------------------------------------------------------------------- #
# Wrapper: block sizing + pallas_call                                          #
# --------------------------------------------------------------------------- #
def _round_up(x, m):
    return (x + m - 1) // m * m


def _vmem_capacity_bytes():
    try:
        return int(pltpu.get_tpu_info().vmem_capacity_bytes)
    except Exception:
        return 64 * 1024 * 1024  # v7x floor — safe lower bound on every generation


def _block_footprint_bytes(bb, tm, N, D, Dv, in_sz, out_sz, sub):
    # In-VMEM tile layout pads the last dim to 128 lanes, second-to-last to `sub`.
    Dl, Dvl = _round_up(D, 128), _round_up(Dv, 128)
    tml, Nl = _round_up(tm, sub), _round_up(N, sub)
    dbl = 2  # double-buffered auto-pipelining
    q_ = dbl * bb * tml * Dl * in_sz
    k_ = dbl * bb * Nl * Dl * in_sz
    v_ = dbl * bb * Nl * Dvl * in_sz
    o_ = dbl * bb * tml * Dvl * out_sz
    c_ = bb * _round_up(D, sub) * Dvl * in_sz  # resident ctx scratch (MXU dtype)
    return q_ + k_ + v_ + o_ + c_


def linear_scaled_dot_product_attention(queries, keys, values, *,
                                        block_m=None, block_b=None,
                                        vmem_limit_bytes=None):
    """LinearScaledDotProductAttention.forward for (B,M,D)/(B,N,D)/(B,N,Dv) inputs
    (B = batch * num_heads after head splitting)."""
    B, M, D = queries.shape
    Bk, N, Dk = keys.shape
    Bv, Nv, Dv = values.shape
    assert B == Bk == Bv and D == Dk and N == Nv
    assert queries.dtype == keys.dtype == values.dtype

    out_dtype = queries.dtype
    in_sz = jnp.dtype(queries.dtype).itemsize
    out_sz = jnp.dtype(out_dtype).itemsize
    sub = 8 if in_sz >= 4 else (16 if in_sz == 2 else 32)

    cap = _vmem_capacity_bytes()
    budget = int(cap * 0.7)

    # M tile: whole M when it fits the generation-default tile, else sublane-aligned.
    if block_m is None:
        block_m = 1024 if cap >= (100 << 20) else 512  # bigger tiles on 128 MiB gens
    tm = M if M <= block_m else max(sub, (block_m // sub) * sub)

    # Batch block: largest divisor of B that leaves >=2 outer ("parallel") steps
    # for megacore when possible and fits the VMEM budget.  No padded batch work.
    if block_b is None:
        bb = 1
        for cand in range(min(B, 16), 0, -1):
            if B % cand:
                continue
            if B >= 2 and B // cand < 2:
                continue
            if _block_footprint_bytes(cand, tm, N, D, Dv, in_sz, out_sz, sub) <= budget:
                bb = cand
                break
    else:
        bb = max(1, min(block_b, B))
        assert B % bb == 0, "block_b must divide batch*heads"

    fp = _block_footprint_bytes(bb, tm, N, D, Dv, in_sz, out_sz, sub)
    if vmem_limit_bytes is None:
        vmem_limit_bytes = int(min(cap * 0.9, max(fp * 1.5 + (4 << 20), 32 << 20)))

    grid = (B // bb, pl.cdiv(M, tm))

    # TODO(synk): for very long N on 64 MiB-VMEM v7x, tile N inside the ctx build
    # (pltpu.emit_pipeline over N chunks with an online max/denominator) instead of
    # keeping whole K/V blocks resident; K/V could also take
    # pipeline_mode=pl.Buffered(1) since they only change on the outer batch axis.
    return pl.pallas_call(
        _linear_attn_kernel,
        out_shape=jax.ShapeDtypeStruct((B, M, Dv), out_dtype),
        grid_spec=pltpu.PrefetchScalarGridSpec(
            num_scalar_prefetch=0,
            grid=grid,
            in_specs=[
                pl.BlockSpec((bb, tm, D), lambda b, m: (b, m, 0)),
                pl.BlockSpec((bb, N, D), lambda b, m: (b, 0, 0)),    # resident over m
                pl.BlockSpec((bb, N, Dv), lambda b, m: (b, 0, 0)),   # resident over m
            ],
            out_specs=pl.BlockSpec((bb, tm, Dv), lambda b, m: (b, m, 0)),
            scratch_shapes=[pltpu.VMEM((bb, D, Dv), queries.dtype)],  # resident ctx
        ),
        compiler_params=pltpu.CompilerParams(
            dimension_semantics=("parallel", "arbitrary"),
            vmem_limit_bytes=vmem_limit_bytes,
        ),
    )(queries, keys, values)


# --------------------------------------------------------------------------- #
# Full module forward (projections / head plumbing in plain JAX)               #
# --------------------------------------------------------------------------- #
def _apart_input(x, num_heads):
    # (B, S, H*Dh) -> (B*H, S, Dh)
    B, S, C = x.shape
    dh = C // num_heads
    x = x.reshape(B, S, num_heads, dh).transpose(0, 2, 1, 3)
    return x.reshape(B * num_heads, S, dh)


def _concat_output(x, num_heads):
    # (B*H, S, Dh) -> (B, S, H*Dh)
    BH, S, dh = x.shape
    B = BH // num_heads
    x = x.reshape(B, num_heads, S, dh).transpose(0, 2, 1, 3)
    return x.reshape(B, S, num_heads * dh)


def two_d_field_mhsa(x, w_qkv, w_o, *, num_heads, attention_fn):
    """TwoDFieldMultiHeadSelfAttention.forward with linear_attention=True,
    bias=False, dropout p=0.0 (identity)."""
    # TODO(synk): ScaledDotProductAttention branch (linear_attention=False) and
    # dropout p>0 are not implemented here.
    B, C, H, W = x.shape
    qkv = jnp.einsum('bchw,oc->bohw', x, w_qkv)            # Conv2d(dim_in, 3*Hh, 1)
    q, k, v = jnp.split(qkv, 3, axis=1)

    def to_seq(t):                                         # 'b c h w -> b (h w) c'
        return t.transpose(0, 2, 3, 1).reshape(B, H * W, t.shape[1])

    q, k, v = (_apart_input(to_seq(t), num_heads) for t in (q, k, v))
    att = attention_fn(q, k, v)                            # (B*H, HW, Dh)
    att = _concat_output(att, num_heads)                   # (B, HW, H*Dh)
    att_2d = att.reshape(B, H, W, att.shape[-1]).transpose(0, 3, 1, 2)
    return jnp.einsum('bchw,oc->bohw', att_2d, w_o)        # Conv2d(Hh, dim_out, 1)


# --------------------------------------------------------------------------- #
# Pure-JAX reference (mirrors the torch forward, f32 HIGHEST precision)        #
# --------------------------------------------------------------------------- #
def _reference_linear_attention(queries, keys, values):
    q = queries.astype(jnp.float32)
    k = keys.astype(jnp.float32)
    v = values.astype(jnp.float32)
    k_sm = jax.nn.softmax(k, axis=-2)                                    # (B, N, D)
    ctx = jnp.einsum('bnd,bne->bde', k_sm, v, precision=lax.Precision.HIGHEST)
    q_sm = jax.nn.softmax(q, axis=-1)                                    # (B, M, D)
    return jnp.einsum('bmd,bde->bme', q_sm, ctx, precision=lax.Precision.HIGHEST)


if __name__ == "__main__":
    key = jax.random.PRNGKey(0)
    kx, kw1, kw2, kq, kk, kv = jax.random.split(key, 6)

    # ---- full-module demo: x (batch=2, dim_in=4, 16x16 field), 2 heads x 16 dims.
    batch, dim_in, Hs, Ws = 2, 4, 16, 16
    num_heads, dim_heads, dim_out = 2, 16, 4
    dim_hiddens = num_heads * dim_heads

    x = jax.random.normal(kx, (batch, dim_in, Hs, Ws), dtype=jnp.float32)
    w_qkv = jax.random.normal(kw1, (3 * dim_hiddens, dim_in), jnp.float32) / jnp.sqrt(dim_in)
    w_o = jax.random.normal(kw2, (dim_out, dim_hiddens), jnp.float32) / jnp.sqrt(dim_hiddens)

    attn = functools.partial(linear_scaled_dot_product_attention, block_m=128)
    out = jax.block_until_ready(
        two_d_field_mhsa(x, w_qkv, w_o, num_heads=num_heads, attention_fn=attn))
    ref = two_d_field_mhsa(x, w_qkv, w_o, num_heads=num_heads,
                           attention_fn=_reference_linear_attention)
    assert out.shape == (batch, dim_out, Hs, Ws)
    err = float(jnp.max(jnp.abs(out - ref)))
    assert jnp.allclose(out, ref, atol=5e-4, rtol=5e-4), f"module mismatch: {err}"

    # ---- attention-core check at awkward (non-8/128-multiple) shapes ----------
    B, M, N, D, Dv = 5, 60, 52, 32, 24
    q = jax.random.normal(kq, (B, M, D), jnp.float32)
    k = jax.random.normal(kk, (B, N, D), jnp.float32)
    v = jax.random.normal(kv, (B, N, Dv), jnp.float32)
    o = jax.block_until_ready(linear_scaled_dot_product_attention(q, k, v))
    r = _reference_linear_attention(q, k, v)
    err = float(jnp.max(jnp.abs(o - r)))
    assert o.shape == (B, M, Dv)
    assert jnp.allclose(o, r, atol=5e-4, rtol=5e-4), f"core f32 mismatch: {err}"

    # ---- bf16 path: f32 softmax in-kernel, bf16 MXU operands / ctx scratch ----
    qb, kb, vb = (t.astype(jnp.bfloat16) for t in (q, k, v))
    ob = jax.block_until_ready(linear_scaled_dot_product_attention(qb, kb, vb))
    err_b = float(jnp.max(jnp.abs(ob.astype(jnp.float32) - r)))
    assert ob.dtype == jnp.bfloat16 and ob.shape == (B, M, Dv)
    assert err_b < 5e-2, f"core bf16 mismatch: {err_b}"

    print("KERNEL_OK")
</pallas_src>

<mosaic_0001>
module attributes {stable_mosaic.version = 11 : i64} {
  func.func @_linear_attn_kernel(%arg0: i32, %arg1: i32, %arg2: memref<2x128x16xf32, #tpu.memory_space<vmem>>, %arg3: memref<2x256x16xf32, #tpu.memory_space<vmem>>, %arg4: memref<2x256x16xf32, #tpu.memory_space<vmem>>, %arg5: memref<2x128x16xf32, #tpu.memory_space<vmem>>, %arg6: memref<2x16x16xf32, #tpu.memory_space<vmem>>) attributes {dimension_semantics = [#tpu.dimension_semantics<parallel>, #tpu.dimension_semantics<arbitrary>], iteration_bounds = array<i64: 2, 2>, scalar_prefetch = 0 : i64, scratch_operands = 1 : i64, tpu.core_type = #tpu.core_type<tc>, window_params = [{transform_indices = @transform_0, window_bounds = array<i64: 2, 128, 16>}, {transform_indices = @transform_1, window_bounds = array<i64: 2, 256, 16>}, {transform_indices = @transform_2, window_bounds = array<i64: 2, 256, 16>}, {transform_indices = @transform_3, window_bounds = array<i64: 2, 128, 16>}]} {
    %c0_i32 = arith.constant 0 : i32
    %0 = arith.cmpi eq, %arg1, %c0_i32 : i32
    %1 = arith.extui %0 : i1 to i32
    %c0_i32_0 = arith.constant 0 : i32
    %2 = arith.cmpi ne, %1, %c0_i32_0 : i32
    scf.if %2 {
      %c0_11 = arith.constant 0 : index
      %c0_12 = arith.constant 0 : index
      %c0_13 = arith.constant 0 : index
      %17 = vector.load %arg3[%c0_11, %c0_12, %c0_13] : memref<2x256x16xf32, #tpu.memory_space<vmem>>, vector<2x256x16xf32>
      %cst_14 = arith.constant dense<0xFF800000> : vector<2x16xf32>
      %18 = vector.multi_reduction <maximumf>, %17, %cst_14 [1] : vector<2x256x16xf32> to vector<2x16xf32>
      %19 = vector.shape_cast %18 : vector<2x16xf32> to vector<2x1x16xf32>
      %20 = vector.broadcast %19 : vector<2x1x16xf32> to vector<2x256x16xf32>
      %21 = arith.subf %17, %20 : vector<2x256x16xf32>
      %22 = math.exp %21 : vector<2x256x16xf32>
      %cst_15 = arith.constant dense<0.000000e+00> : vector<2x16xf32>
      %23 = vector.multi_reduction <add>, %22, %cst_15 [1] : vector<2x256x16xf32> to vector<2x16xf32>
      %c0_16 = arith.constant 0 : index
      %c0_17 = arith.constant 0 : index
      %c0_18 = arith.constant 0 : index
      %24 = vector.load %arg4[%c0_16, %c0_17, %c0_18] : memref<2x256x16xf32, #tpu.memory_space<vmem>>, vector<2x256x16xf32>
      %cst_19 = arith.constant dense<0.000000e+00> : vector<2x16x16xf32>
      %25 = tpu.matmul %22, %24, %cst_19 {dimension_numbers = #tpu.dot_dimension_numbers<[1], [1], [2], [2], [0, 0, 0, 2, 1, 2], [0], [0]>} : vector<2x256x16xf32>, vector<2x256x16xf32>, vector<2x16x16xf32> -> vector<2x16x16xf32>
      %26 = tpu.reciprocal %23 : vector<2x16xf32> -> vector<2x16xf32>
      %27 = vector.shape_cast %26 : vector<2x16xf32> to vector<2x16x1xf32>
      %28 = vector.broadcast %27 : vector<2x16x1xf32> to vector<2x16x16xf32>
      %29 = arith.mulf %25, %28 : vector<2x16x16xf32>
      %c0_20 = arith.constant 0 : index
      %c0_21 = arith.constant 0 : index
      %c0_22 = arith.constant 0 : index
      %30 = vector.load %arg6[%c0_20, %c0_21, %c0_22] : memref<2x16x16xf32, #tpu.memory_space<vmem>>, vector<2x16x16xf32>
      tpu.vector_store %arg6[%c0_20, %c0_21, %c0_22], %29 {strides = array<i32>} : memref<2x16x16xf32, #tpu.memory_space<vmem>>, vector<2x16x16xf32>,
    } else {
    }
    %c0 = arith.constant 0 : index
    %c0_1 = arith.constant 0 : index
    %c0_2 = arith.constant 0 : index
    %3 = vector.load %arg2[%c0, %c0_1, %c0_2] : memref<2x128x16xf32, #tpu.memory_space<vmem>>, vector<2x128x16xf32>
    %cst = arith.constant dense<0xFF800000> : vector<2x128xf32>
    %4 = vector.multi_reduction <maximumf>, %3, %cst [2] : vector<2x128x16xf32> to vector<2x128xf32>
    %5 = vector.shape_cast %4 : vector<2x128xf32> to vector<2x128x1xf32>
    %6 = vector.broadcast %5 : vector<2x128x1xf32> to vector<2x128x16xf32>
    %7 = arith.subf %3, %6 : vector<2x128x16xf32>
    %8 = math.exp %7 : vector<2x128x16xf32>
    %cst_3 = arith.constant dense<0.000000e+00> : vector<2x128xf32>
    %9 = vector.multi_reduction <add>, %8, %cst_3 [2] : vector<2x128x16xf32> to vector<2x128xf32>
    %10 = vector.shape_cast %9 : vector<2x128xf32> to vector<2x128x1xf32>
    %c0_4 = arith.constant 0 : index
    %c0_5 = arith.constant 0 : index
    %c0_6 = arith.constant 0 : index
    %11 = vector.load %arg6[%c0_4, %c0_5, %c0_6] : memref<2x16x16xf32, #tpu.memory_space<vmem>>, vector<2x16x16xf32>
    %cst_7 = arith.constant dense<0.000000e+00> : vector<2x128x16xf32>
    %12 = tpu.matmul %8, %11, %cst_7 {dimension_numbers = #tpu.dot_dimension_numbers<[2], [1], [1], [2], [0, 0, 0, 1, 1, 2], [0], [0]>} : vector<2x128x16xf32>, vector<2x16x16xf32>, vector<2x128x16xf32> -> vector<2x128x16xf32>
    %13 = tpu.reciprocal %10 : vector<2x128x1xf32> -> vector<2x128x1xf32>
    %14 = vector.broadcast %13 : vector<2x128x1xf32> to vector<2x128x16xf32>
    %15 = arith.mulf %12, %14 : vector<2x128x16xf32>
    %c0_8 = arith.constant 0 : index
    %c0_9 = arith.constant 0 : index
    %c0_10 = arith.constant 0 : index
    %16 = vector.load %arg5[%c0_8, %c0_9, %c0_10] : memref<2x128x16xf32, #tpu.memory_space<vmem>>, vector<2x128x16xf32>
    tpu.vector_store %arg5[%c0_8, %c0_9, %c0_10], %15 {strides = array<i32>} : memref<2x128x16xf32, #tpu.memory_space<vmem>>, vector<2x128x16xf32>,
    return
  }
  func.func @transform_0(%arg0: i32, %arg1: i32) -> (i32, i32, i32) {
    %c0_i32 = arith.constant 0 : i32
    %c0_i32_0 = arith.constant 0 : i32
    return %arg0, %arg1, %c0_i32 : i32, i32, i32
  }
  func.func @transform_1(%arg0: i32, %arg1: i32) -> (i32, i32, i32) {
    %c0_i32 = arith.constant 0 : i32
    %c0_i32_0 = arith.constant 0 : i32
    %c0_i32_1 = arith.constant 0 : i32
    return %arg0, %c0_i32, %c0_i32_0 : i32, i32, i32
  }
  func.func @transform_2(%arg0: i32, %arg1: i32) -> (i32, i32, i32) {
    %c0_i32 = arith.constant 0 : i32
    %c0_i32_0 = arith.constant 0 : i32
    %c0_i32_1 = arith.constant 0 : i32
    return %arg0, %c0_i32, %c0_i32_0 : i32, i32, i32
  }
  func.func @transform_3(%arg0: i32, %arg1: i32) -> (i32, i32, i32) {
    %c0_i32 = arith.constant 0 : i32
    %c0_i32_0 = arith.constant 0 : i32
    return %arg0, %arg1, %c0_i32 : i32, i32, i32
  }
}

</mosaic_0001>

<bundles_post_ra>
// kernel: tpu_custom_call.1
= control target key start
LH: loop header
LB: loop body
LE: loop exit
PB: predicated region body
PF: predicated region fallthrough
CT: control target
= control target key end

     0   :  { %s3159_s12 = smov 0   ;;  %s3161_s13 = smov 0   ;;  %s4527_s0 = inlined_call_operand.vmem [shape: f32[4,256,16], index: 0, kind: input, shape index: {}]   ;;  %s4528_s1 = inlined_call_operand.vmem [shape: f32[4,256,16], index: 1, kind: input, shape index: {}]   ;;  %s4529_s2 = inlined_call_operand.vmem [shape: f32[4,256,16], index: 2, kind: input, shape index: {}]   ;;  %s4530_s3 = inlined_call_operand.vmem [shape: f32[4,256,16], index: 3, kind: output, shape index: {}]  }
   0x1   :  { %s3163_s14 = smov 0   ;;  %s3165_s15 = smov 0  }
   0x2   :  { %s3167_s16 = smov 0   ;;  %s3169_s17 = smov 0  }
   0x3   :  { %s3171_s18 = smov 0  }
   0x4 LB: > { %s22_s19 = sadd.s32 1, %s3129_s16  ;;  %s25_s20 = sadd.s32 1, %s3133_s17  ;;  %s3137_s18 = sphi %s3171_s18, %s13_s18   ;;  %s3133_s17 = sphi %s3169_s17, %s4624_s17   ;;  %s3129_s16 = sphi %s3167_s16, %s4623_s16   ;;  %s3125_s15 = sphi %s3165_s15, %s4622_s15   ;;  %s3121_s14 = sphi %s3163_s14, %s4621_s14   ;;  %s3117_s13 = sphi %s3161_s13, %s4620_s13   ;;  %s3113_s12 = sphi %s3159_s12, %s4619_s12  }
   0x5   : > { %p23_p0 = scmp.ge.s32.totalorder %s22_s19, 2  ;;  %s2374_s21 = sadd.s32 4294967295, %s3137_s18  }
   0x6   : > { %p41_p1 = scmp.ne.s32.totalorder %s3117_s13, %s3113_s12  ;;  %p42_p2 = scmp.eq.s32.totalorder %s3137_s18, 0 }
   0x7   : > { %s4626_s19 = smov (%p23_p0, %s22_s19), 0  ;;  %s4628_s20 = smov (!%p23_p0, %s25_s20), %s3133_s17 }
   0x8   : > { %p27_p3 = scmp.ge.s32.totalorder %s4628_s20, 2  ;;  %p125_p4 = scmp.eq.s32.totalorder %s2374_s21, 3 }
   0x9   : > { %s30_s22 = ssub.s32 %s3129_s16, %s4626_s19  ;;  %p43_p5 = por %p42_p2, %p41_p1 }
   0xa   : > { %s4630_s20 = smov (%p27_p3, %s4628_s20), 0  ;;  %p3207_p6 = por %p125_p4, %p41_p1 }
   0xb   : > { %s29_s24 = ssub.s32 %s3133_s17, %s4630_s20  ;;  %s34_s26 = sadd.s32 1, %s3117_s13 }
   0xc   : > { %s31_s25 = sor.u32 %s30_s22, %s29_s24  ;;  %p2377_p8 = scmp.ge.s32.totalorder %s3137_s18, 4 }
   0xd   : > { %p32_p7 = scmp.eq.s32.totalorder %s31_s25, 0 }
   0xe   : > { %147 = sbr.rel (%p2377_p8) target bundleno = 44 (0x2c), region = 16 }
   0xf   : > { %s3215_s27 = scalar_select %p32_p7, %s3117_s13, %s34_s26  }
  0x15   : > { %150 = sbr.rel (!%p43_p5) target bundleno = 44 (0x2c), region = 20  ;;  %s152_s28 = sand.u32 (%p43_p5), 1, %s3117_s13  }
  0x16   : > { %s2380_s29 = sshll.u32 (%p43_p5), %s3129_s16, 4  ;;  %s2378_s30 = sshll.u32 (%p43_p5), %s152_s28, 8 }
  0x17   : > { %s2432_s4 = sshll.u32 (%p43_p5), %s3133_s17, 6  ;;  %s3229_s10 = scalar_lea.vmem (%p43_p5), [#allocation3], %s2378_s30 }
  0x18   : > { %s158_s5 = sadd.s32 (%p43_p5), %s2432_s4, %s2380_s29 }
  0x19   : > { %s2382_s6 = sshll.u32 (%p43_p5), %s158_s5, 3 }
  0x1a   : > { %s3224_s9 = scalar_lea.vmem (%p43_p5), %s4527_s0, %s2382_s6 }
  0x1b   : > { %v250_v0 = vld [vmem:[%s3224_s9] sm:$0xff] (%p43_p5)  ;;  %v252_v1 = vld [vmem:[%s3224_s9 + $0x8] sm:$0xff] (%p43_p5)  ;;  %v254_v2 = vld [vmem:[%s3224_s9 + $0x10] sm:$0xff] (%p43_p5) }
  0x1c   : > { %251 = vst [vmem:[%s3229_s10] sm:$0xff] %v250_v0  ;;  %253 = vst [vmem:[%s3229_s10 + $0x8] sm:$0xff] %v252_v1  ;;  %v256_v3 = vld [vmem:[%s3224_s9 + $0x18] sm:$0xff]  ;;  %v258_v4 = vld [vmem:[%s3224_s9 + $0x20] sm:$0xff] }
  0x1d   : > { %255 = vst [vmem:[%s3229_s10 + $0x10] sm:$0xff] %v254_v2  ;;  %v260_v5 = vld [vmem:[%s3224_s9 + $0x28] sm:$0xff]  ;;  %257 = vst [vmem:[%s3229_s10 + $0x18] sm:$0xff] %v256_v3  ;;  %v262_v6 = vld [vmem:[%s3224_s9 + $0x30] sm:$0xff] }
  0x1e   : > { %259 = vst [vmem:[%s3229_s10 + $0x20] sm:$0xff] %v258_v4  ;;  %261 = vst [vmem:[%s3229_s10 + $0x28] sm:$0xff] %v260_v5  ;;  %v264_v7 = vld [vmem:[%s3224_s9 + $0x38] sm:$0xff]  ;;  %v266_v8 = vld [vmem:[%s3224_s9 + $0x40] sm:$0xff] }
  0x1f   : > { %263 = vst [vmem:[%s3229_s10 + $0x30] sm:$0xff] %v262_v6  ;;  %265 = vst [vmem:[%s3229_s10 + $0x38] sm:$0xff] %v264_v7  ;;  %v268_v9 = vld [vmem:[%s3224_s9 + $0x48] sm:$0xff]  ;;  %v270_v10 = vld [vmem:[%s3224_s9 + $0x50] sm:$0xff] }
  0x20   : > { %267 = vst [vmem:[%s3229_s10 + $0x40] sm:$0xff] %v266_v8  ;;  %v272_v11 = vld [vmem:[%s3224_s9 + $0x58] sm:$0xff]  ;;  %269 = vst [vmem:[%s3229_s10 + $0x48] sm:$0xff] %v268_v9  ;;  %v274_v12 = vld [vmem:[%s3224_s9 + $0x60] sm:$0xff] }
  0x21   : > { %271 = vst [vmem:[%s3229_s10 + $0x50] sm:$0xff] %v270_v10  ;;  %273 = vst [vmem:[%s3229_s10 + $0x58] sm:$0xff] %v272_v11  ;;  %v276_v13 = vld [vmem:[%s3224_s9 + $0x68] sm:$0xff]  ;;  %v278_v14 = vld [vmem:[%s3224_s9 + $0x70] sm:$0xff] }
  0x22   : > { %275 = vst [vmem:[%s3229_s10 + $0x60] sm:$0xff] %v274_v12  ;;  %277 = vst [vmem:[%s3229_s10 + $0x68] sm:$0xff] %v276_v13  ;;  %v280_v15 = vld [vmem:[%s3224_s9 + $0x78] sm:$0xff]  ;;  %v282_v16 = vld [vmem:[%s3224_s9 + $0x100] sm:$0xff] }
  0x23   : > { %279 = vst [vmem:[%s3229_s10 + $0x70] sm:$0xff] %v278_v14  ;;  %v284_v17 = vld [vmem:[%s3224_s9 + $0x108] sm:$0xff]  ;;  %281 = vst [vmem:[%s3229_s10 + $0x78] sm:$0xff] %v280_v15  ;;  %v286_v18 = vld [vmem:[%s3224_s9 + $0x110] sm:$0xff] }
  0x24   : > { %283 = vst [vmem:[%s3229_s10 + $0x80] sm:$0xff] %v282_v16  ;;  %285 = vst [vmem:[%s3229_s10 + $0x88] sm:$0xff] %v284_v17  ;;  %v288_v19 = vld [vmem:[%s3224_s9 + $0x118] sm:$0xff]  ;;  %v290_v20 = vld [vmem:[%s3224_s9 + $0x120] sm:$0xff] }
  0x25   : > { %287 = vst [vmem:[%s3229_s10 + $0x90] sm:$0xff] %v286_v18  ;;  %289 = vst [vmem:[%s3229_s10 + $0x98] sm:$0xff] %v288_v19  ;;  %v292_v21 = vld [vmem:[%s3224_s9 + $0x128] sm:$0xff]  ;;  %v294_v22 = vld [vmem:[%s3224_s9 + $0x130] sm:$0xff] }
  0x26   : > { %291 = vst [vmem:[%s3229_s10 + $0xa0] sm:$0xff] %v290_v20  ;;  %v296_v23 = vld [vmem:[%s3224_s9 + $0x138] sm:$0xff]  ;;  %293 = vst [vmem:[%s3229_s10 + $0xa8] sm:$0xff] %v292_v21  ;;  %v298_v24 = vld [vmem:[%s3224_s9 + $0x140] sm:$0xff] }
  0x27   : > { %295 = vst [vmem:[%s3229_s10 + $0xb0] sm:$0xff] %v294_v22  ;;  %297 = vst [vmem:[%s3229_s10 + $0xb8] sm:$0xff] %v296_v23  ;;  %v300_v25 = vld [vmem:[%s3224_s9 + $0x148] sm:$0xff]  ;;  %v302_v26 = vld [vmem:[%s3224_s9 + $0x150] sm:$0xff] }
  0x28   : > { %299 = vst [vmem:[%s3229_s10 + $0xc0] sm:$0xff] %v298_v24  ;;  %301 = vst [vmem:[%s3229_s10 + $0xc8] sm:$0xff] %v300_v25  ;;  %v304_v27 = vld [vmem:[%s3224_s9 + $0x158] sm:$0xff]  ;;  %v306_v28 = vld [vmem:[%s3224_s9 + $0x160] sm:$0xff] }
  0x29   : > { %303 = vst [vmem:[%s3229_s10 + $0xd0] sm:$0xff] %v302_v26  ;;  %v308_v29 = vld [vmem:[%s3224_s9 + $0x168] sm:$0xff]  ;;  %305 = vst [vmem:[%s3229_s10 + $0xd8] sm:$0xff] %v304_v27  ;;  %v310_v30 = vld [vmem:[%s3224_s9 + $0x170] sm:$0xff] }
  0x2a   : > { %307 = vst [vmem:[%s3229_s10 + $0xe0] sm:$0xff] %v306_v28  ;;  %309 = vst [vmem:[%s3229_s10 + $0xe8] sm:$0xff] %v308_v29  ;;  %v312_v31 = vld [vmem:[%s3224_s9 + $0x178] sm:$0xff] }
  0x2b   : > { %311 = vst [vmem:[%s3229_s10 + $0xf0] sm:$0xff] %v310_v30  ;;  %313 = vst [vmem:[%s3229_s10 + $0xf8] sm:$0xff] %v312_v31 }
  0x2c PF: > { %p2383_p9 = scmp.ge.s32.totalorder %s3137_s18, 1  ;;  %p338_p10 = scmp.lt.s32.totalorder %s3137_s18, 5 }
  0x2e   : > { %p339_p11 = pnand %p2383_p9, %p338_p10 }
  0x2f   : > { %s345_s11 = sand.u32 (!%p339_p11), 1, %s3113_s12   ;;  %s2386_s21 = sshll.u32 (!%p339_p11), %s3125_s15, 1 }
  0x30   : > { %342 = sbr.rel (%p339_p11) target bundleno = 934 (0x3a6), region = 66  ;;  %s2384_s22 = sshll.u32 (!%p339_p11), %s345_s11, 8 }
  0x31   : > { %p382_p12 = scmp.lt.s32.totalorder (!%p339_p11), %s2386_s21, 3  ;;  %s3306_s5 = scalar_lea.vmem (!%p339_p11), [#allocation3], %s2384_s22 }
  0x32   : > { %s3308_s6 = scalar_lea.vmem (!%p339_p11), [#allocation4], %s2384_s22  ;;  %p2392_p13 = scmp.ne.s32.totalorder (!%p339_p11), %s3121_s14, 0 }
  0x37   : > { %s4632_s21 = smov (!%p382_p12, %s2386_s21), 3  ;;  %400 = sbr.rel (%p2392_p13) target bundleno = 490 (0x1ea), region = 74 }
  0x38   : > { %s2433_s24 = sshll.u32 %s4632_s21, 8 }
  0x39   : > { %s3299_s28 = scalar_lea.vmem %s4528_s1, %s2433_s24  ;;  %s3304_s4 = scalar_lea.vmem %s4529_s2, %s2433_s24 }
  0x3e   : > { %v3312_v32 = vld [vmem:[%s3299_s28] sm:$0xff]  ;;  %v3315_v33 = vld [vmem:[%s3299_s28 + $0x8] sm:$0xff]  ;;  %v3318_v34 = vld [vmem:[%s3299_s28 + $0x10] sm:$0xff]  ;;  %vm465_vm0 = vcmask 130048  }
  0x3f   : > { %v3321_v35 = vld [vmem:[%s3299_s28 + $0x18] sm:$0xff]  ;;  %v3324_v36 = vld [vmem:[%s3299_s28 + $0x20] sm:$0xff]  ;;  %v3327_v37 = vld [vmem:[%s3299_s28 + $0x28] sm:$0xff]  ;;  %v466_v38 = vsel %vm465_vm0, %v3312_v32, -inf  ;;  %v467_v39 = vsel %vm465_vm0, %v3315_v33, -inf  ;;  %v468_v40 = vsel %vm465_vm0, %v3318_v34, -inf }
  0x40   : > { %4561 = vst [vmem:[#allocation5_spill] sm:$0xff] %v3327_v37  ;;  %v3336_v41 = vld [vmem:[%s3299_s28 + $0x30] sm:$0xff]  ;;  %v3339_v42 = vld [vmem:[%s3299_s28 + $0x38] sm:$0xff]  ;;  %v3342_v43 = vld [vmem:[%s3299_s28 + $0x40] sm:$0xff]  ;;  %v469_v44 = vmax.f32 %v466_v38, %v468_v40  ;;  %v470_v45 = vsel %vm465_vm0, %v3321_v35, -inf  ;;  %v472_v46 = vsel %vm465_vm0, %v3324_v36, -inf }
  0x41   : > { %4562 = vst [vmem:[#allocation6_spill] sm:$0xff] %v3336_v41  ;;  %4563 = vst [vmem:[#allocation7_spill] sm:$0xff] %v3339_v42  ;;  %v474_v47 = vsel %vm465_vm0, %v3327_v37, -inf  ;;  %v3351_v48 = vld [vmem:[%s3299_s28 + $0x48] sm:$0xff]  ;;  %v471_v49 = vmax.f32 %v467_v39, %v470_v45  ;;  %v476_v50 = vsel %vm465_vm0, %v3336_v41, -inf  ;;  %v3356_v51 = vld [vmem:[%s3299_s28 + $0x50] sm:$0xff] }
  0x42   : > { %4564 = vst [vmem:[#allocation8_spill] sm:$0xff] %v3342_v43  ;;  %4565 = vst [vmem:[#allocation9_spill] sm:$0xff] %v3351_v48  ;;  %v412_v52 = vld [vmem:[%s3299_s28 + $0x58] sm:$0xff]  ;;  %v473_v53 = vmax.f32 %v469_v44, %v472_v46  ;;  %v478_v54 = vsel %vm465_vm0, %v3339_v42, -inf  ;;  %v413_v55 = vld [vmem:[%s3299_s28 + $0x60] sm:$0xff]  ;;  %v480_v59 = vsel %vm465_vm0, %v3342_v43, -inf }
  0x43   : > { %4566 = vst [vmem:[#allocation10_spill] sm:$0xff] %v3356_v51  ;;  %v414_v56 = vld [vmem:[%s3299_s28 + $0x68] sm:$0xff]  ;;  %v415_v57 = vld [vmem:[%s3299_s28 + $0x70] sm:$0xff]  ;;  %v475_v58 = vmax.f32 %v471_v49, %v474_v47  ;;  %v416_v60 = vld [vmem:[%s3299_s28 + $0x78] sm:$0xff]  ;;  %v482_v0 = vsel %vm465_vm0, %v3351_v48, -inf  ;;  %v484_v5 = vsel %vm465_vm0, %v3356_v51, -inf }
  0x44   : > { %v3368_v61 = vld [vmem:[%s3299_s28 + $0x80] sm:$0xff]  ;;  %v3371_v62 = vld [vmem:[%s3299_s28 + $0x88] sm:$0xff]  ;;  %v477_v63 = vmax.f32 %v473_v53, %v476_v50  ;;  %v3376_v1 = vld [vmem:[%s3299_s28 + $0x90] sm:$0xff]  ;;  %v486_v6 = vsel %vm465_vm0, %v412_v52, -inf  ;;  %v488_v10 = vsel %vm465_vm0, %v413_v55, -inf  ;;  %v490_v11 = vsel %vm465_vm0, %v414_v56, -inf }
  0x45   : > { %v3379_v2 = vld [vmem:[%s3299_s28 + $0x98] sm:$0xff]  ;;  %v3382_v3 = vld [vmem:[%s3299_s28 + $0xa0] sm:$0xff]  ;;  %v479_v4 = vmax.f32 %v475_v58, %v478_v54  ;;  %v3388_v7 = vld [vmem:[%s3299_s28 + $0xa8] sm:$0xff]  ;;  %v492_v12 = vsel %vm465_vm0, %v415_v57, -inf  ;;  %v494_v14 = vsel %vm465_vm0, %v416_v60, -inf  ;;  %v496_v15 = vsel %vm465_vm0, %v3368_v61, -inf }
  0x46   : > { %4567 = vst [vmem:[#allocation11_spill] sm:$0xff] %v3388_v7  ;;  %v3391_v8 = vld [vmem:[%s3299_s28 + $0xb0] sm:$0xff]  ;;  %v481_v9 = vmax.f32 %v477_v63, %v480_v59  ;;  %v498_v16 = vsel %vm465_vm0, %v3371_v62, -inf  ;;  %v3402_v17 = vld [vmem:[%s3299_s28 + $0xb8] sm:$0xff]  ;;  %v3405_v18 = vld [vmem:[%s3299_s28 + $0x100] sm:$0xff]  ;;  %v3409_v20 = vsel %vm465_vm0, %v3376_v1, -inf }
  0x47   : > { %4568 = vst [vmem:[#allocation12_spill] sm:$0xff] %v3391_v8  ;;  %v483_v13 = vmax.f32 %v479_v4, %v482_v0  ;;  %4569 = vst [vmem:[#allocation13_spill] sm:$0xff] %v3402_v17  ;;  %v3413_v21 = vsel %vm465_vm0, %v3379_v2, -inf  ;;  %v504_v22 = vsel %vm465_vm0, %v3382_v3, -inf  ;;  %v3418_v23 = vld [vmem:[%s3299_s28 + $0xc0] sm:$0xff]  ;;  %v3421_v24 = vld [vmem:[%s3299_s28 + $0x108] sm:$0xff] }
  0x48   : > { %v485_v19 = vmax.f32 %v481_v9, %v484_v5  ;;  %4570 = vst [vmem:[#allocation14_spill] sm:$0xff] %v3418_v23  ;;  %v3424_v25 = vld [vmem:[%s3299_s28 + $0x110] sm:$0xff]  ;;  %v3427_v26 = vld [vmem:[%s3299_s28 + $0x118] sm:$0xff]  ;;  %v506_v28 = vsel %vm465_vm0, %v3388_v7, -inf  ;;  %v3433_v29 = vsel %vm465_vm0, %v3391_v8, -inf  ;;  %v535_v30 = vsel %vm465_vm0, %v3405_v18, -inf }
  0x49   : > { %v487_v27 = vmax.f32 %v483_v13, %v486_v6  ;;  %v3438_v31 = vld [vmem:[%s3299_s28 + $0x120] sm:$0xff]  ;;  %v3441_v38 = vld [vmem:[%s3299_s28 + $0x128] sm:$0xff]  ;;  %v3444_v39 = vld [vmem:[%s3299_s28 + $0x130] sm:$0xff]  ;;  %v536_v44 = vsel %vm465_vm0, %v3421_v24, -inf  ;;  %v537_v45 = vsel %vm465_vm0, %v3424_v25, -inf  ;;  %v539_v46 = vsel %vm465_vm0, %v3427_v26, -inf }
  0x4a   : > { %4571 = vst [vmem:[#allocation15_spill] sm:$0xff] %v3438_v31  ;;  %4572 = vst [vmem:[#allocation16_spill] sm:$0xff] %v3441_v38  ;;  %v489_v40 = vmax.f32 %v485_v19, %v488_v10  ;;  %v3453_v47 = vld [vmem:[%s3299_s28 + $0x138] sm:$0xff]  ;;  %v3456_v49 = vld [vmem:[%s3299_s28 + $0x140] sm:$0xff]  ;;  %v538_v53 = vmax.f32 %v535_v30, %v537_v45  ;;  %v540_v54 = vmax.f32 %v536_v44, %v539_v46  ;;  %v541_v55 = vsel %vm465_vm0, %v3438_v31, -inf }
  0x4b   : > { %4573 = vst [vmem:[#allocation17_spill] sm:$0xff] %v3444_v39  ;;  %4574 = vst [vmem:[#allocation18_spill] sm:$0xff] %v3453_v47  ;;  %v3459_v50 = vld [vmem:[%s3299_s28 + $0x148] sm:$0xff]  ;;  %v491_v52 = vmax.f32 %v487_v27, %v490_v11  ;;  %v543_v58 = vsel %vm465_vm0, %v3441_v38, -inf  ;;  %v545_v59 = vsel %vm465_vm0, %v3444_v39, -inf  ;;  %v547_v60 = vsel %vm465_vm0, %v3453_v47, -inf }
  0x4c   : > { %4575 = vst [vmem:[#allocation19_spill] sm:$0xff] %v3456_v49  ;;  %4576 = vst [vmem:[#allocation20_spill] sm:$0xff] %v3459_v50  ;;  %v3464_v56 = vld [vmem:[%s3299_s28 + $0xc8] sm:$0xff]  ;;  %v493_v57 = vmax.f32 %v489_v40, %v492_v12  ;;  %v3473_v63 = vld [vmem:[%s3299_s28 + $0xd0] sm:$0xff]  ;;  %v510_v6 = vsel %vm465_vm0, %v3402_v17, -inf  ;;  %v542_v9 = vmax.f32 %v538_v53, %v541_v55  ;;  %v544_v10 = vmax.f32 %v540_v54, %v543_v58 }
  0x4d   : > { %4577 = vst [vmem:[#allocation21_spill] sm:$0xff] %v3464_v56  ;;  %4578 = vst [vmem:[#allocation22_spill] sm:$0xff] %v3473_v63  ;;  %v3476_v0 = vld [vmem:[%s3299_s28 + $0x150] sm:$0xff]  ;;  %v3479_v4 = vld [vmem:[%s3299_s28 + $0x158] sm:$0xff]  ;;  %v495_v5 = vmax.f32 %v491_v52, %v494_v14  ;;  %v512_v13 = vsel %vm465_vm0, %v3418_v23, -inf  ;;  %v549_v19 = vsel %vm465_vm0, %v3456_v49, -inf }
  0x4e   : > { %4579 = vst [vmem:[#allocation23_spill] sm:$0xff] %v3476_v0  ;;  %4580 = vst [vmem:[#allocation24_spill] sm:$0xff] %v3479_v4  ;;  %v3484_v11 = vld [vmem:[%s3299_s28 + $0xd8] sm:$0xff]  ;;  %v497_v12 = vmax.f32 %v493_v57, %v496_v15  ;;  %v551_v14 = vsel %vm465_vm0, %v3459_v50, -inf  ;;  %v3493_v27 = vld [vmem:[%s3299_s28 + $0xe0] sm:$0xff]  ;;  %v514_v15 = vsel %vm465_vm0, %v3464_v56, -inf  ;;  %v546_v45 = vmax.f32 %v542_v9, %v545_v59 }
  0x4f   : > { %4581 = vst [vmem:[#allocation25_spill] sm:$0xff] %v3484_v11  ;;  %4582 = vst [vmem:[#allocation26_spill] sm:$0xff] %v3493_v27  ;;  %v3496_v30 = vld [vmem:[%s3299_s28 + $0x160] sm:$0xff]  ;;  %v3499_v40 = vld [vmem:[%s3299_s28 + $0x168] sm:$0xff]  ;;  %v499_v44 = vmax.f32 %v495_v5, %v498_v16  ;;  %v548_v46 = vmax.f32 %v544_v10, %v547_v60  ;;  %v3509_v54 = vsel %vm465_vm0, %v3473_v63, -inf  ;;  %v553_v55 = vsel %vm465_vm0, %v3476_v0, -inf }
  0x50   : > { %4583 = vst [vmem:[#allocation27_spill] sm:$0xff] %v3496_v30  ;;  %4584 = vst [vmem:[#allocation28_spill] sm:$0xff] %v3499_v40  ;;  %v3504_v52 = vld [vmem:[%s3299_s28 + $0xe8] sm:$0xff]  ;;  %v501_v53 = vmax.f32 %v497_v12, %v3409_v20  ;;  %v555_v16 = vsel %vm465_vm0, %v3479_v4, -inf  ;;  %v3516_v57 = vld [vmem:[%s3299_s28 + $0xf0] sm:$0xff]  ;;  %v3523_v20 = vsel %vm465_vm0, %v3484_v11, -inf  ;;  %v550_v5 = vmax.f32 %v546_v45, %v549_v19 }
  0x51   : > { %4585 = vst [vmem:[#allocation29_spill] sm:$0xff] %v3504_v52  ;;  %4586 = vst [vmem:[#allocation30_spill] sm:$0xff] %v3516_v57  ;;  %v447_v58 = vld [vmem:[%s3299_s28 + $0x170] sm:$0xff]  ;;  %v448_v59 = vld [vmem:[%s3299_s28 + $0x178] sm:$0xff]  ;;  %v503_v60 = vmax.f32 %v499_v44, %v3413_v21  ;;  %v552_v9 = vmax.f32 %v548_v46, %v551_v14  ;;  %v520_v4 = vsel %vm465_vm0, %v3493_v27, -inf  ;;  %v557_v0 = vsel %vm465_vm0, %v3496_v30, -inf }
  0x52   : > { %v3526_v10 = vld [vmem:[%s3299_s28 + $0xf8] sm:$0xff]  ;;  %v505_v12 = vmax.f32 %v501_v53, %v504_v22  ;;  %v559_v21 = vsel %vm465_vm0, %v3499_v40, -inf  ;;  %v3535_v44 = vld [vmem:[%s3299_s28 + $0x180] sm:$0xff]  ;;  %v3538_v11 = vld [vmem:[%s3299_s28 + $0x188] sm:$0xff]  ;;  %v522_v22 = vsel %vm465_vm0, %v3504_v52, -inf  ;;  %v554_v45 = vmax.f32 %v550_v5, %v553_v55 }
  0x53   : > { %4587 = vst [vmem:[#allocation31_spill] sm:$0xff] %v3526_v10  ;;  %v3541_v19 = vld [vmem:[%s3299_s28 + $0x190] sm:$0xff]  ;;  %v507_v14 = vmax.f32 %v503_v60, %v506_v28  ;;  %v556_v46 = vmax.f32 %v552_v9, %v555_v16  ;;  %v3546_v53 = vld [vmem:[%s3299_s28 + $0x198] sm:$0xff]  ;;  %v3549_v30 = vld [vmem:[%s3299_s28 + $0x1a0] sm:$0xff]  ;;  %v3557_v28 = vsel %vm465_vm0, %v3516_v57, -inf  ;;  %v561_v60 = vsel %vm465_vm0, %v447_v58, -inf }
  0x54   : > { %v3552_v27 = vld [vmem:[%s3299_s28 + $0x1a8] sm:$0xff]  ;;  %v509_v40 = vmax.f32 %v505_v12, %v3433_v29  ;;  %v563_v55 = vsel %vm465_vm0, %v448_v59, -inf  ;;  %v3562_v16 = vld [vmem:[%s3299_s28 + $0x1b0] sm:$0xff]  ;;  %v3566_v9 = vsel %vm465_vm0, %v3526_v10, -inf  ;;  %v558_v52 = vmax.f32 %v554_v45, %v557_v0  ;;  %v950_v12 = vld [vmem:[%s3304_s4 + $0x80] sm:$0xff] }
  0x55   : > { %4588 = vst [vmem:[#allocation32_spill] sm:$0xff] %v3552_v27  ;;  %4589 = vst [vmem:[#allocation33_spill] sm:$0xff] %v3562_v16  ;;  %v511_v5 = vmax.f32 %v507_v14, %v510_v6  ;;  %v560_v29 = vmax.f32 %v556_v46, %v559_v21  ;;  %v951_v57 = vld [vmem:[%s3304_s4 + $0x88] sm:$0xff]  ;;  %v565_v58 = vsel %vm465_vm0, %v3535_v44, -inf  ;;  %v567_v59 = vsel %vm465_vm0, %v3538_v11, -inf  ;;  %v982_v14 = vld [vmem:[%s3304_s4 + $0x180] sm:$0xff] }
  0x56   : > { %v513_v51 = vmax.f32 %v509_v40, %v512_v13  ;;  %v569_v6 = vsel %vm465_vm0, %v3541_v19, -inf  ;;  %v983_v0 = vld [vmem:[%s3304_s4 + $0x188] sm:$0xff]  ;;  %v934_v21 = vld [vmem:[%s3304_s4] sm:$0xff]  ;;  %v3580_v45 = vld [vmem:[%s3299_s28 + $0x1b8] sm:$0xff]  ;;  %v562_v13 = vmax.f32 %v558_v52, %v561_v60  ;;  %v571_v10 = vsel %vm465_vm0, %v3546_v53, -inf }
  0x57   : > { %v515_v46 = vmax.f32 %v511_v5, %v514_v15  ;;  %v564_v40 = vmax.f32 %v560_v29, %v563_v55  ;;  %v935_v63 = vld [vmem:[%s3304_s4 + $0x8] sm:$0xff]  ;;  %v966_v50 = vld [vmem:[%s3304_s4 + $0x100] sm:$0xff]  ;;  %v573_v43 = vsel %vm465_vm0, %v3549_v30, -inf  ;;  %v575_v15 = vsel %vm465_vm0, %v3552_v27, -inf  ;;  %v952_v60 = vld [vmem:[%s3304_s4 + $0x90] sm:$0xff] }
  0x58   : > { %v967_v48 = vld [vmem:[%s3304_s4 + $0x108] sm:$0xff]  ;;  %v3588_v56 = vld [vmem:[%s3299_s28 + $0x1c0] sm:$0xff]  ;;  %v517_v49 = vmax.f32 %v513_v51, %v3509_v54  ;;  %v3597_v52 = vsel %vm465_vm0, %v3562_v16, -inf  ;;  %v953_v55 = vld [vmem:[%s3304_s4 + $0x98] sm:$0xff]  ;;  %v566_v54 = vmax.f32 %v562_v13, %v565_v58  ;;  %v2604_v47 = vpack.c.bf16 %v951_v57, %v950_v12 }
  0x59   : > { %v984_v5 = vld [vmem:[%s3304_s4 + $0x190] sm:$0xff]  ;;  %v3603_v29 = vld [vmem:[%s3299_s28 + $0x1c8] sm:$0xff]  ;;  %v519_v51 = vmax.f32 %v515_v46, %v3523_v20  ;;  %v568_v23 = vmax.f32 %v564_v40, %v567_v59  ;;  %v985_v42 = vld [vmem:[%s3304_s4 + $0x198] sm:$0xff]  ;;  %v2636_v17 = vpack.c.bf16 %v983_v0, %v982_v14  ;;  %v2606_v27 = vpack.c.bf16 %v935_v63, %v934_v21 }
  0x5a   : > { %v936_v39 = vld [vmem:[%s3304_s4 + $0x10] sm:$0xff]  ;;  %v937_v16 = vld [vmem:[%s3304_s4 + $0x18] sm:$0xff]  ;;  %v521_v38 = vmax.f32 %v517_v49, %v520_v4  ;;  %v2638_v41 = vpack.c.bf16 %v967_v48, %v966_v50  ;;  %v954_v37 = vld [vmem:[%s3304_s4 + $0xa0] sm:$0xff]  ;;  %v570_v20 = vmax.f32 %v566_v54, %v569_v6  ;;  %2605 = vmatprep.subr.bf16.mxu0 %v2604_v47  ;;  %v2608_v57 = vpack.c.bf16 %v953_v55, %v952_v60 }
  0x5b   : > { %v968_v8 = vld [vmem:[%s3304_s4 + $0x110] sm:$0xff]  ;;  %v969_v31 = vld [vmem:[%s3304_s4 + $0x118] sm:$0xff]  ;;  %v523_v7 = vmax.f32 %v519_v51, %v522_v22  ;;  %v572_v58 = vmax.f32 %v568_v23, %v571_v10  ;;  %v955_v12 = vld [vmem:[%s3304_s4 + $0xa8] sm:$0xff]  ;;  %v579_v50 = vsel %vm465_vm0, %v3580_v45, -inf  ;;  %2637 = vmatprep.subr.bf16.mxu1 %v2636_v17  ;;  %2607 = vmatpush3.bf16.msra.mxu0 %v2606_v27  ;;  %v2640_v23 = vpack.c.bf16 %v985_v42, %v984_v5 }
  0x5c   : > { %v986_v59 = vld [vmem:[%s3304_s4 + $0x1a0] sm:$0xff]  ;;  %v987_v46 = vld [vmem:[%s3304_s4 + $0x1a8] sm:$0xff]  ;;  %v3616_v13 = vld [vmem:[%s3299_s28 + $0x1d0] sm:$0xff]  ;;  %v525_v48 = vmax.f32 %v521_v38, %v3557_v28  ;;  %v2610_v47 = vpack.c.bf16 %v937_v16, %v936_v39  ;;  %v574_v10 = vmax.f32 %v570_v20, %v573_v43  ;;  %v581_v6 = vsel %vm465_vm0, %v3588_v56, -inf  ;;  %2639 = vmatpush3.bf16.msra.mxu1 %v2638_v41  ;;  %2609 = vmatprep.subr.bf16.mxu0 %v2608_v57 }
  0x5d   : > { %v3619_v49 = vld [vmem:[%s3299_s28 + $0x1d8] sm:$0xff]  ;;  %v938_v63 = vld [vmem:[%s3304_s4 + $0x20] sm:$0xff]  ;;  %v527_v4 = vmax.f32 %v523_v7, %v3566_v9  ;;  %v576_v22 = vmax.f32 %v572_v58, %v575_v15  ;;  %v939_v38 = vld [vmem:[%s3304_s4 + $0x28] sm:$0xff]  ;;  %v583_v7 = vsel %vm465_vm0, %v3603_v29, -inf  ;;  %2641 = vmatprep.subr.bf16.mxu1 %v2640_v23  ;;  %v2642_v43 = vpack.c.bf16 %v969_v31, %v968_v8 }
  0x5e   : > { %v970_v17 = vld [vmem:[%s3304_s4 + $0x120] sm:$0xff]  ;;  %v971_v42 = vld [vmem:[%s3304_s4 + $0x128] sm:$0xff]  ;;  %v2612_v27 = vpack.c.bf16 %v955_v12, %v954_v37  ;;  %v2644_v28 = vpack.c.bf16 %v987_v46, %v986_v59  ;;  %v956_v16 = vld [vmem:[%s3304_s4 + $0xb0] sm:$0xff]  ;;  %v578_v0 = vmax.f32 %v574_v10, %v3597_v52  ;;  %v585_v37 = vsel %vm465_vm0, %v3616_v13, -inf }
  0x5f   : > { %v3632_v39 = vld [vmem:[%s3299_s28 + $0x1e0] sm:$0xff]  ;;  %v957_v41 = vld [vmem:[%s3304_s4 + $0xb8] sm:$0xff]  ;;  %v3639_v9 = vld [vmem:[%s3299_s28 + $0x1e8] sm:$0xff]  ;;  %v528_v14 = vmax.f32 %v525_v48, %v527_v4  ;;  %v580_v21 = vmax.f32 %v576_v22, %v579_v50  ;;  %v587_v8 = vsel %vm465_vm0, %v3619_v49, -inf  ;;  %2611 = vmatpush3.bf16.msra.mxu0 %v2610_v47  ;;  %v2614_v31 = vpack.c.bf16 %v939_v38, %v938_v63 }
  0x60   : > { %v988_v40 = vld [vmem:[%s3304_s4 + $0x1b0] sm:$0xff]  ;;  %v989_v15 = vld [vmem:[%s3304_s4 + $0x1b8] sm:$0xff]  ;;  %v2646_v52 = vpack.c.bf16 %v971_v42, %v970_v17  ;;  %v582_v54 = vmax.f32 %v578_v0, %v581_v6  ;;  %2643 = vmatpush3.bf16.msra.mxu1 %v2642_v43  ;;  %2613 = vmatprep.subr.bf16.mxu0 %v2612_v27  ;;  %v2616_v58 = vpack.c.bf16 %v957_v41, %v956_v16  ;;  %v589_v46 = vsel %vm465_vm0, %v3632_v39, -inf  ;;  %v958_v23 = vld [vmem:[%s3304_s4 + $0xc0] sm:$0xff] }
  0x61   : > { %v3645_v60 = vld [vmem:[%s3299_s28 + $0x1f0] sm:$0xff]  ;;  %v3648_v55 = vld [vmem:[%s3299_s28 + $0x1f8] sm:$0xff]  ;;  %v529_v51 = vrot.slane %v528_v14, 4  ;;  %v584_v20 = vmax.f32 %v580_v21, %v583_v7  ;;  %v591_v48 = vsel %vm465_vm0, %v3639_v9, -inf  ;;  %2645 = vmatprep.subr.bf16.mxu1 %v2644_v28  ;;  %v2648_v50 = vpack.c.bf16 %v989_v15, %v988_v40  ;;  %v959_v47 = vld [vmem:[%s3304_s4 + $0xc8] sm:$0xff] }
  0x62   : > { %v940_v5 = vld [vmem:[%s3304_s4 + $0x30] sm:$0xff]  ;;  %v941_v57 = vld [vmem:[%s3304_s4 + $0x38] sm:$0xff]  ;;  %v586_v4 = vmax.f32 %v582_v54, %v585_v37  ;;  %v990_v22 = vld [vmem:[%s3304_s4 + $0x1c0] sm:$0xff]  ;;  %v593_v38 = vsel %vm465_vm0, %v3645_v60, -inf  ;;  %v595_v17 = vsel %vm465_vm0, %v3648_v55, -inf  ;;  %v2620_v16 = vpack.c.bf16 %v959_v47, %v958_v23 }
  0x63   : > { %v972_v12 = vld [vmem:[%s3304_s4 + $0x130] sm:$0xff]  ;;  %v973_v59 = vld [vmem:[%s3304_s4 + $0x138] sm:$0xff]  ;;  %v530_v63 = vmax.f32 %v528_v14, %v529_v51  ;;  %v588_v10 = vmax.f32 %v584_v20, %v587_v8  ;;  %v991_v6 = vld [vmem:[%s3304_s4 + $0x1c8] sm:$0xff]  ;;  %2615 = vmatpush3.bf16.msra.mxu0 %v2614_v31  ;;  %v2618_v42 = vpack.c.bf16 %v941_v57, %v940_v5 }
  0x64   : > { %v2650_v7 = vpack.c.bf16 %v973_v59, %v972_v12  ;;  %v590_v27 = vmax.f32 %v586_v4, %v589_v46  ;;  %2647 = vmatpush3.bf16.msra.mxu1 %v2646_v52  ;;  %2617 = vmatprep.subr.bf16.mxu0 %v2616_v58  ;;  %v942_v41 = vld [vmem:[%s3304_s4 + $0x40] sm:$0xff]  ;;  %v943_v14 = vld [vmem:[%s3304_s4 + $0x48] sm:$0xff]  ;;  %v2652_v0 = vpack.c.bf16 %v991_v6, %v990_v22  ;;  %v960_v15 = vld [vmem:[%s3304_s4 + $0xd0] sm:$0xff] }
  0x65   : > { %v531_v43 = vrot.slane %v530_v63, 2  ;;  %v592_v28 = vmax.f32 %v588_v10, %v591_v48  ;;  %2649 = vmatprep.subr.bf16.mxu1 %v2648_v50  ;;  %v974_v21 = vld [vmem:[%s3304_s4 + $0x140] sm:$0xff]  ;;  %v975_v40 = vld [vmem:[%s3304_s4 + $0x148] sm:$0xff]  ;;  %v961_v5 = vld [vmem:[%s3304_s4 + $0xd8] sm:$0xff]  ;;  %v2622_v54 = vpack.c.bf16 %v943_v14, %v942_v41 }
  0x66   : > { %v594_v8 = vmax.f32 %v590_v27, %v593_v38  ;;  %v992_v52 = vld [vmem:[%s3304_s4 + $0x1d0] sm:$0xff]  ;;  %v993_v51 = vld [vmem:[%s3304_s4 + $0x1d8] sm:$0xff]  ;;  %v2654_v46 = vpack.c.bf16 %v975_v40, %v974_v21  ;;  %v962_v50 = vld [vmem:[%s3304_s4 + $0xe0] sm:$0xff]  ;;  %v2624_v47 = vpack.c.bf16 %v961_v5, %v960_v15 }
  0x67   : > { %v532_v37 = vmax.f32 %v530_v63, %v531_v43  ;;  %v596_v31 = vmax.f32 %v592_v28, %v595_v17  ;;  %2619 = vmatpush3.bf16.msra.mxu0 %v2618_v42  ;;  %v944_v20 = vld [vmem:[%s3304_s4 + $0x50] sm:$0xff]  ;;  %v945_v58 = vld [vmem:[%s3304_s4 + $0x58] sm:$0xff]  ;;  %v963_v23 = vld [vmem:[%s3304_s4 + $0xe8] sm:$0xff]  ;;  %v2656_v10 = vpack.c.bf16 %v993_v51, %v992_v52 }
  0x68   : > { %v976_v57 = vld [vmem:[%s3304_s4 + $0x150] sm:$0xff]  ;;  %2651 = vmatpush3.bf16.msra.mxu1 %v2650_v7  ;;  %2621 = vmatprep.subr.bf16.mxu0 %v2620_v16  ;;  %v977_v48 = vld [vmem:[%s3304_s4 + $0x158] sm:$0xff]  ;;  %v994_v22 = vld [vmem:[%s3304_s4 + $0x1e0] sm:$0xff]  ;;  %v2626_v38 = vpack.c.bf16 %v945_v58, %v944_v20  ;;  %v2628_v42 = vpack.c.bf16 %v963_v23, %v962_v50 }
  0x69   : > { %v533_v12 = vrot.slane %v532_v37, 1  ;;  %v597_v59 = vmax.f32 %v594_v8, %v596_v31  ;;  %2653 = vmatprep.subr.bf16.mxu1 %v2652_v0  ;;  %v995_v6 = vld [vmem:[%s3304_s4 + $0x1e8] sm:$0xff]  ;;  %v2658_v17 = vpack.c.bf16 %v977_v48, %v976_v57  ;;  %v946_v7 = vld [vmem:[%s3304_s4 + $0x60] sm:$0xff]  ;;  %v996_v8 = vld [vmem:[%s3304_s4 + $0x1f0] sm:$0xff] }
  0x6a   : > { %v947_v41 = vld [vmem:[%s3304_s4 + $0x68] sm:$0xff]  ;;  %v978_v14 = vld [vmem:[%s3304_s4 + $0x160] sm:$0xff]  ;;  %v2660_v15 = vpack.c.bf16 %v995_v6, %v994_v22 }
  0x6b   : > { %v3684_v63 = vmax.f32 %v532_v37, %v533_v12  ;;  %v598_v4 = vrot.slane %v597_v59, 4  ;;  %2623 = vmatpush3.bf16.msra.mxu0 %v2622_v54  ;;  %v979_v0 = vld [vmem:[%s3304_s4 + $0x168] sm:$0xff]  ;;  %v965_v37 = vld [vmem:[%s3304_s4 + $0xf8] sm:$0xff]  ;;  %v2630_v54 = vpack.c.bf16 %v947_v41, %v946_v7 }
  0x6c   : > { %2655 = vmatpush3.bf16.msra.mxu1 %v2654_v46  ;;  %2625 = vmatprep.subr.bf16.mxu0 %v2624_v47 }
  0x6d   : > { %v599_v43 = vmax.f32 %v597_v59, %v598_v4  ;;  %v620_v27 = vsub.f32 %v3368_v61, %v3684_v63  ;;  %v604_v28 = vsub.f32 %v3312_v32, %v3684_v63  ;;  %v621_v16 = vsub.f32 %v3371_v62, %v3684_v63  ;;  %v964_v61 = vld [vmem:[%s3304_s4 + $0xf0] sm:$0xff]  ;;  %2657 = vmatprep.subr.bf16.mxu1 %v2656_v10  ;;  %v997_v62 = vld [vmem:[%s3304_s4 + $0x1f8] sm:$0xff] }
  0x6e   : > { %v605_v21 = vsub.f32 %v3315_v33, %v3684_v63  ;;  %v606_v40 = vsub.f32 %v3318_v34, %v3684_v63  ;;  %v622_v51 = vsub.f32 %v3376_v1, %v3684_v63  ;;  %v2662_v33 = vpack.c.bf16 %v979_v0, %v978_v14 }
  0x6f   : > { %v600_v32 = vrot.slane %v599_v43, 2  ;;  %v700_v31 = vmul.f32 1.442695, %v620_v27  ;;  %v668_v5 = vmul.f32 1.442695, %v604_v28  ;;  %2627 = vmatpush3.bf16.msra.mxu0 %v2626_v38  ;;  %v623_v34 = vsub.f32 %v3379_v2, %v3684_v63 }
  0x70   : > { %v670_v52 = vmul.f32 1.442695, %v605_v21  ;;  %v702_v58 = vmul.f32 1.442695, %v621_v16  ;;  %2659 = vmatpush3.bf16.msra.mxu1 %v2658_v17  ;;  %2629 = vmatprep.subr.bf16.mxu0 %v2628_v42  ;;  %v2632_v57 = vpack.c.bf16 %v965_v37, %v964_v61  ;;  %v672_v12 = vmul.f32 1.442695, %v606_v40 }
  0x71   : > { %v601_v20 = vmax.f32 %v599_v43, %v600_v32  ;;  %2816 = vpow2.f32 %v700_v31  ;;  %v607_v59 = vsub.f32 %v3321_v35, %v3684_v63  ;;  %2661 = vmatprep.subr.bf16.mxu1 %v2660_v15  ;;  %v2664_v46 = vpack.c.bf16 %v997_v62, %v996_v8  ;;  %v4592_v15 = vld [vmem:[#allocation15_spill] sm:$0xff]  ;;  %v4593_v8 = vld [vmem:[#allocation12_spill] sm:$0xff]  ;;  %v4594_v31 = vld [vmem:[#allocation6_spill] sm:$0xff] }
  0x72   : > { %2818 = vpow2.f32 %v668_v5  ;;  %v704_v1 = vmul.f32 1.442695, %v622_v51  ;;  %v706_v23 = vmul.f32 1.442695, %v623_v34  ;;  %v624_v47 = vsub.f32 %v3382_v3, %v3684_v63  ;;  %v4595_v51 = vld [vmem:[#allocation32_spill] sm:$0xff] }
  0x73   : > { %v602_v48 = vrot.slane %v601_v20, 1  ;;  %2820 = vpow2.f32 %v670_v52  ;;  %2631 = vmatpush3.bf16.msra.mxu0 %v2630_v54  ;;  %v674_v2 = vmul.f32 1.442695, %v607_v59  ;;  %v608_v35 = vsub.f32 %v3324_v36, %v3684_v63  ;;  %v4597_v34 = vld [vmem:[#allocation16_spill] sm:$0xff] }
  0x74   : > { %2822 = vpow2.f32 %v702_v58  ;;  %2663 = vmatpush3.bf16.msra.mxu1 %v2662_v33  ;;  %2633 = vmatprep.subr.bf16.mxu0 %v2632_v57  ;;  %v708_v7 = vmul.f32 1.442695, %v624_v47  ;;  %v626_v32 = vsub.f32 %v4593_v8, %v3684_v63  ;;  %v610_v5 = vsub.f32 %v4594_v31, %v3684_v63  ;;  %v4596_v33 = vld [vmem:[#allocation13_spill] sm:$0xff] }
  0x75   : > { %v3712_v50 = vmax.f32 %v601_v20, %v602_v48  ;;  %2824 = vpow2.f32 %v672_v12  ;;  %2665 = vmatprep.subr.bf16.mxu1 %v2664_v46  ;;  %v676_v41 = vmul.f32 1.442695, %v608_v35  ;;  %v627_v20 = vsub.f32 %v4596_v33, %v3684_v63  ;;  %v4598_v12 = vld [vmem:[#allocation33_spill] sm:$0xff] }
  0x76   : > { %2826 = vpow2.f32 %v704_v1 }
  0x77   : > { %v652_v4 = vsub.f32 %v3535_v44, %v3712_v50  ;;  %v636_v10 = vsub.f32 %v3405_v18, %v3712_v50  ;;  %v653_v22 = vsub.f32 %v3538_v11, %v3712_v50  ;;  %v637_v6 = vsub.f32 %v3421_v24, %v3712_v50 }
  0x78   : > { %v654_v38 = vsub.f32 %v3541_v19, %v3712_v50  ;;  %v638_v36 = vsub.f32 %v3424_v25, %v3712_v50  ;;  %v655_v3 = vsub.f32 %v3546_v53, %v3712_v50  ;;  %2828 = vpow2.f32 %v706_v23  ;;  %v4590_v53 = vld [vmem:[#allocation11_spill] sm:$0xff]  ;;  %v4599_v23 = vld [vmem:[#allocation17_spill] sm:$0xff] }
  0x79   : > { %v764_v44 = vmul.f32 1.442695, %v652_v4  ;;  %v732_v17 = vmul.f32 1.442695, %v636_v10  ;;  %v766_v42 = vmul.f32 1.442695, %v653_v22  ;;  %v639_v11 = vsub.f32 %v3427_v26, %v3712_v50 }
  0x7a   : > { %v734_v18 = vmul.f32 1.442695, %v637_v6  ;;  %2830 = vpow2.f32 %v674_v2  ;;  %v768_v24 = vmul.f32 1.442695, %v654_v38  ;;  %v736_v43 = vmul.f32 1.442695, %v638_v36 }
  0x7b   : > { %2832 = vpow2.f32 %v764_v44  ;;  %v3734_v19 = vpop.eup %2816  ;;  %v656_v25 = vsub.f32 %v3549_v30, %v3712_v50  ;;  %v625_v27 = vsub.f32 %v4590_v53, %v3684_v63  ;;  %v770_v16 = vmul.f32 1.442695, %v655_v3  ;;  %v4591_v26 = vld [vmem:[#allocation5_spill] sm:$0xff] }
  0x7c   : > { %2834 = vpow2.f32 %v732_v17  ;;  %v2819_v28 = vpop.eup %2818  ;;  %v609_v14 = vsub.f32 %v4591_v26, %v3684_v63  ;;  %v738_v40 = vmul.f32 1.442695, %v639_v11  ;;  %v640_v61 = vsub.f32 %v4592_v15, %v3712_v50 }
  0x7d   : > { %2836 = vpow2.f32 %v766_v42  ;;  %v3742_v0 = vpop.eup %2820  ;;  %v796_v21 = vsel %vm465_vm0, %v2819_v28, 0.0  ;;  %v772_v52 = vmul.f32 1.442695, %v656_v25  ;;  %v657_v54 = vsub.f32 %v4595_v51, %v3712_v50 }
  0x7e   : > { %2838 = vpow2.f32 %v734_v18  ;;  %v3747_v30 = vpop.eup %2822  ;;  %v797_v37 = vsel %vm465_vm0, %v3742_v0, 0.0  ;;  %v641_v57 = vsub.f32 %v4597_v34, %v3712_v50  ;;  %v658_v59 = vsub.f32 %v4598_v12, %v3712_v50 }
  0x7f   : > { %2840 = vpow2.f32 %v768_v24  ;;  %v3755_v62 = vpop.eup %2824  ;;  %v798_v58 = vadd.f32 %v797_v37, %v796_v21  ;;  %v740_v1 = vmul.f32 1.442695, %v640_v61  ;;  %v642_v2 = vsub.f32 %v4599_v23, %v3712_v50 }
  0x80   : > { %2842 = vpow2.f32 %v736_v43  ;;  %v3765_v46 = vpop.eup %2826  ;;  %v799_v48 = vsel %vm465_vm0, %v3755_v62, 0.0  ;;  %v710_v35 = vmul.f32 1.442695, %v625_v27  ;;  %v678_v4 = vmul.f32 1.442695, %v609_v14  ;;  %v4601_v14 = vld [vmem:[#allocation18_spill] sm:$0xff] }
  0x81   : > { %2844 = vpow2.f32 %v770_v16  ;;  %v712_v10 = vmul.f32 1.442695, %v626_v32  ;;  %v774_v6 = vmul.f32 1.442695, %v657_v54  ;;  %v680_v38 = vmul.f32 1.442695, %v610_v5 }
  0x82   : > { %2846 = vpow2.f32 %v738_v40  ;;  %v3771_v47 = vpop.eup %2828  ;;  %v659_v36 = vsub.f32 %v3580_v45, %v3712_v50  ;;  %v800_v44 = vadd.f32 %v799_v48, %v798_v58  ;;  %v742_v17 = vmul.f32 1.442695, %v641_v57  ;;  %v4600_v45 = vld [vmem:[#allocation7_spill] sm:$0xff]  ;;  %v4602_v32 = vld [vmem:[#allocation14_spill] sm:$0xff] }
  0x83   : > { %2848 = vpow2.f32 %v708_v7  ;;  %v776_v42 = vmul.f32 1.442695, %v658_v59  ;;  %v744_v24 = vmul.f32 1.442695, %v642_v2  ;;  %v714_v7 = vmul.f32 1.442695, %v627_v20 }
  0x84   : > { %v3773_v22 = vpop.eup %2830  ;;  %2850 = vpow2.f32 %v772_v52  ;;  %v611_v27 = vsub.f32 %v4600_v45, %v3684_v63  ;;  %v778_v26 = vmul.f32 1.442695, %v659_v36  ;;  %v643_v21 = vsub.f32 %v4601_v14, %v3712_v50 }
  0x85   : > { %v3777_v3 = vpop.eup %2832  ;;  %2852 = vpow2.f32 %v676_v41  ;;  %v801_v61 = vsel %vm465_vm0, %v3773_v22, 0.0  ;;  %v628_v31 = vsub.f32 %v4602_v32, %v3684_v63  ;;  %v660_v5 = vsub.f32 %v3588_v56, %v3712_v50 }
  0x86   : > { %v2835_v18 = vpop.eup %2834  ;;  %v2732_v11 = vpack.i.bf16 %v3777_v3, %v3734_v19  ;;  %2854 = vpow2.f32 %v740_v1  ;;  %v682_v54 = vmul.f32 1.442695, %v611_v27  ;;  %v802_v57 = vadd.f32 %v801_v61, %v800_v44  ;;  %v4607_v61 = vld [vmem:[#allocation20_spill] sm:$0xff] }
  0x87   : > { %v3781_v43 = vpop.eup %2836  ;;  %v865_v25 = vsel %vm465_vm0, %v2835_v18, 0.0  ;;  %v2774_v53 = vpack.i.bf16 %v2835_v18, %v2819_v28  ;;  %2856 = vpow2.f32 %v710_v35  ;;  %v746_v48 = vmul.f32 1.442695, %v643_v21  ;;  %v4604_v35 = vld [vmem:[#allocation19_spill] sm:$0xff]  ;;  %v4606_v18 = vld [vmem:[#allocation9_spill] sm:$0xff] }
  0x88   : > { %v2839_v16 = vpop.eup %2838  ;;  %2733 = vxpose.xlu0.b32.start [1/16] (narrow) %v2732_v11, 16  ;;  %v2734_v41 = vpack.i.bf16 %v3781_v43, %v3747_v30  ;;  %2858 = vpow2.f32 %v774_v6  ;;  %v716_v2 = vmul.f32 1.442695, %v628_v31  ;;  %v780_v36 = vmul.f32 1.442695, %v660_v5 }
  0x89   : > { %v3790_v40 = vpop.eup %2840  ;;  %2775 = vxpose.xlu1.b32.start [1/16] (narrow) %v2774_v53, 16  ;;  %v866_v15 = vsel %vm465_vm0, %v2839_v16, 0.0  ;;  %v2776_v28 = vpack.i.bf16 %v2839_v16, %v3742_v0  ;;  %2860 = vpow2.f32 %v678_v4  ;;  %v4603_v0 = vld [vmem:[#allocation8_spill] sm:$0xff]  ;;  %v644_v4 = vsub.f32 %v4604_v35, %v3712_v50 }
  0x8a   : > { %v2843_v37 = vpop.eup %2842  ;;  %v867_v8 = vadd.f32 %v866_v15, %v865_v25  ;;  %2862 = vpow2.f32 %v742_v17  ;;  %v612_v33 = vsub.f32 %v4603_v0, %v3684_v63  ;;  %v2736_v58 = vpack.i.bf16 %v3790_v40, %v3765_v46 }
  0x8b   : > { %v3800_v52 = vpop.eup %2844  ;;  %v868_v51 = vsel %vm465_vm0, %v2843_v37, 0.0  ;;  %2864 = vpow2.f32 %v712_v10  ;;  %v2778_v56 = vpack.i.bf16 %v2843_v37, %v3755_v62  ;;  %v4605_v62 = vld [vmem:[#allocation21_spill] sm:$0xff]  ;;  %v613_v11 = vsub.f32 %v4606_v18, %v3684_v63 }
  0x8c   : > { %v2847_v20 = vpop.eup %2846  ;;  %2735 = vxpose.xlu0.b32.cont [2/16] (narrow) %v2734_v41, 16  ;;  %v869_v34 = vadd.f32 %v868_v51, %v867_v8  ;;  %2866 = vpow2.f32 %v776_v42  ;;  %v2738_v6 = vpack.i.bf16 %v3800_v52, %v3771_v47  ;;  %v629_v44 = vsub.f32 %v4605_v62, %v3684_v63 }
  0x8d   : > { %v3807_v12 = vpop.eup %2848  ;;  %2777 = vxpose.xlu1.b32.cont [2/16] (narrow) %v2776_v28, 16  ;;  %v870_v59 = vsel %vm465_vm0, %v2847_v20, 0.0  ;;  %2868 = vpow2.f32 %v680_v38  ;;  %v2780_v38 = vpack.i.bf16 %v2847_v20, %v3773_v22  ;;  %v684_v53 = vmul.f32 1.442695, %v612_v33 }
  0x8e   : > { %v3811_v1 = vpop.eup %2850  ;;  %v871_v23 = vadd.f32 %v870_v59, %v869_v34  ;;  %2870 = vpow2.f32 %v744_v24  ;;  %v748_v16 = vmul.f32 1.442695, %v644_v4  ;;  %v661_v22 = vsub.f32 %v3603_v29, %v3712_v50  ;;  %v4608_v34 = vld [vmem:[#allocation22_spill] sm:$0xff] }
  0x8f   : > { %v2853_v10 = vpop.eup %2852  ;;  %2872 = vpow2.f32 %v714_v7  ;;  %v718_v21 = vmul.f32 1.442695, %v629_v44  ;;  %v645_v37 = vsub.f32 %v4607_v61, %v3712_v50  ;;  %v686_v8 = vmul.f32 1.442695, %v613_v11 }
  0x90   : > { %v2855_v17 = vpop.eup %2854  ;;  %2737 = vxpose.xlu0.b32.cont [3/16] (narrow) %v2736_v58, 16  ;;  %v803_v42 = vsel %vm465_vm0, %v2853_v10, 0.0  ;;  %2874 = vpow2.f32 %v778_v26  ;;  %v2740_v26 = vpack.i.bf16 %v3811_v1, %v3807_v12  ;;  %v782_v0 = vmul.f32 1.442695, %v661_v22 }
  0x91   : > { %v3823_v24 = vpop.eup %2856  ;;  %2779 = vxpose.xlu1.b32.cont [3/16] (narrow) %v2778_v56, 16  ;;  %v872_v25 = vsel %vm465_vm0, %v2855_v17, 0.0  ;;  %v804_v7 = vadd.f32 %v803_v42, %v802_v57  ;;  %2876 = vpow2.f32 %v682_v54  ;;  %v2782_v14 = vpack.i.bf16 %v2855_v17, %v2853_v10  ;;  %v4610_v42 = vld [vmem:[#allocation23_spill] sm:$0xff] }
  0x92   : > { %v3826_v45 = vpop.eup %2858  ;;  %v873_v27 = vadd.f32 %v872_v25, %v871_v23  ;;  %2878 = vpow2.f32 %v746_v48  ;;  %v750_v58 = vmul.f32 1.442695, %v645_v37  ;;  %v630_v57 = vsub.f32 %v4608_v34, %v3684_v63  ;;  %v4609_v23 = vld [vmem:[#allocation10_spill] sm:$0xff] }
  0x93   : > { %v2861_v41 = vpop.eup %2860  ;;  %2880 = vpow2.f32 %v716_v2  ;;  %v2742_v20 = vpack.i.bf16 %v3826_v45, %v3823_v24  ;;  %v662_v48 = vsub.f32 %v3616_v13, %v3712_v50  ;;  %v614_v2 = vsub.f32 %v4609_v23, %v3684_v63 }
  0x94   : > { %v2863_v15 = vpop.eup %2862  ;;  %2739 = vxpose.xlu0.b32.cont [4/16] (narrow) %v2738_v6, 16  ;;  %v805_v28 = vsel %vm465_vm0, %v2861_v41, 0.0  ;;  %2882 = vpow2.f32 %v780_v36  ;;  %v720_v44 = vmul.f32 1.442695, %v630_v57  ;;  %v646_v18 = vsub.f32 %v4610_v42, %v3712_v50 }
  0x95   : > { %v3835_v32 = vpop.eup %2864  ;;  %2781 = vxpose.xlu1.b32.cont [4/16] (narrow) %v2780_v38, 16  ;;  %v874_v29 = vsel %vm465_vm0, %v2863_v15, 0.0  ;;  %v2784_v31 = vpack.i.bf16 %v2863_v15, %v2861_v41  ;;  %v806_v5 = vadd.f32 %v805_v28, %v804_v7  ;;  %2884 = vpow2.f32 %v684_v53  ;;  %v4611_v53 = vld [vmem:[#allocation25_spill] sm:$0xff] }
  0x96   : > { %v3838_v51 = vpop.eup %2866  ;;  %v875_v54 = vadd.f32 %v874_v29, %v873_v27  ;;  %2886 = vpow2.f32 %v748_v16  ;;  %v784_v38 = vmul.f32 1.442695, %v662_v48  ;;  %v688_v7 = vmul.f32 1.442695, %v614_v2  ;;  %v4613_v2 = vld [vmem:[#allocation26_spill] sm:$0xff] }
  0x97   : > { %v2869_v33 = vpop.eup %2868  ;;  %2888 = vpow2.f32 %v718_v21  ;;  %v2744_v13 = vpack.i.bf16 %v3838_v51, %v3835_v32  ;;  %v631_v27 = vsub.f32 %v4611_v53, %v3684_v63  ;;  %v663_v61 = vsub.f32 %v3619_v49, %v3712_v50 }
  0x98   : > { %v2871_v56 = vpop.eup %2870  ;;  %2741 = vxpose.xlu0.b32.cont [5/16] (narrow) %v2740_v26, 16  ;;  %v807_v59 = vsel %vm465_vm0, %v2869_v33, 0.0  ;;  %2890 = vpow2.f32 %v686_v8 }
  0x99   : > { %v3849_v35 = vpop.eup %2872  ;;  %2783 = vxpose.xlu1.b32.cont [5/16] (narrow) %v2782_v14, 16  ;;  %v876_v4 = vsel %vm465_vm0, %v2871_v56, 0.0  ;;  %v2786_v10 = vpack.i.bf16 %v2871_v56, %v2869_v33  ;;  %v808_v6 = vadd.f32 %v807_v59, %v806_v5  ;;  %2892 = vpow2.f32 %v782_v0 }
  0x9a   : > { %v3852_v36 = vpop.eup %2874  ;;  %v877_v62 = vadd.f32 %v876_v4, %v875_v54  ;;  %2894 = vpow2.f32 %v750_v58  ;;  %v752_v14 = vmul.f32 1.442695, %v646_v18  ;;  %v722_v37 = vmul.f32 1.442695, %v631_v27  ;;  %v4612_v54 = vld [vmem:[#allocation24_spill] sm:$0xff]  ;;  %v4614_v27 = vld [vmem:[#allocation27_spill] sm:$0xff] }
  0x9b   : > { %v2877_v17 = vpop.eup %2876  ;;  %2896 = vpow2.f32 %v720_v44  ;;  %v2746_v15 = vpack.i.bf16 %v3852_v36, %v3849_v35  ;;  %v647_v0 = vsub.f32 %v4612_v54, %v3712_v50  ;;  %v786_v34 = vmul.f32 1.442695, %v663_v61  ;;  %v2949_v44 = vld [vmem:[%s3299_s28 + $0x60] sm:$0xff] }
  0x9c   : > { %v2879_v11 = vpop.eup %2878  ;;  %2743 = vxpose.xlu0.b32.cont [6/16] (narrow) %v2742_v20, 16  ;;  %v809_v25 = vsel %vm465_vm0, %v2877_v17, 0.0  ;;  %2898 = vpow2.f32 %v784_v38  ;;  %v632_v4 = vsub.f32 %v4613_v2, %v3684_v63  ;;  %v665_v61 = vsub.f32 %v3639_v9, %v3712_v50  ;;  %v4616_v9 = vld [vmem:[#allocation28_spill] sm:$0xff]  ;;  %v4617_v2 = vld [vmem:[#allocation30_spill] sm:$0xff] }
  0x9d   : > { %v3861_v16 = vpop.eup %2880  ;;  %2785 = vxpose.xlu1.b32.cont [6/16] (narrow) %v2784_v31, 16  ;;  %v878_v22 = vsel %vm465_vm0, %v2879_v11, 0.0  ;;  %2900 = vpow2.f32 %v688_v7  ;;  %v810_v28 = vadd.f32 %v809_v25, %v808_v6  ;;  %v2948_v31 = vld [vmem:[%s3299_s28 + $0x58] sm:$0xff]  ;;  %v2788_v33 = vpack.i.bf16 %v2879_v11, %v2877_v17 }
  0x9e   : > { %v3864_v41 = vpop.eup %2882  ;;  %v879_v26 = vadd.f32 %v878_v22, %v877_v62  ;;  %2902 = vpow2.f32 %v752_v14  ;;  %v615_v5 = vsub.f32 %v2948_v31, %v3684_v63  ;;  %v754_v23 = vmul.f32 1.442695, %v647_v0  ;;  %v2950_v0 = vld [vmem:[%s3299_s28 + $0x68] sm:$0xff] }
  0x9f   : > { %v2885_v21 = vpop.eup %2884  ;;  %2904 = vpow2.f32 %v722_v37  ;;  %v2748_v59 = vpack.i.bf16 %v3864_v41, %v3861_v16  ;;  %v664_v62 = vsub.f32 %v3632_v39, %v3712_v50  ;;  %v616_v17 = vsub.f32 %v2949_v44, %v3684_v63  ;;  %v2951_v44 = vld [vmem:[%s3299_s28 + $0x70] sm:$0xff] }
  0xa0   : > { %v2887_v8 = vpop.eup %2886  ;;  %2745 = vxpose.xlu0.b32.cont [7/16] (narrow) %v2744_v13, 16  ;;  %v811_v29 = vsel %vm465_vm0, %v2885_v21, 0.0  ;;  %v690_v57 = vmul.f32 1.442695, %v615_v5  ;;  %2906 = vpow2.f32 %v786_v34  ;;  %v724_v11 = vmul.f32 1.442695, %v632_v4 }
  0xa1   : > { %2787 = vxpose.xlu1.b32.cont [7/16] (narrow) %v2786_v10, 16  ;;  %v880_v20 = vsel %vm465_vm0, %v2887_v8, 0.0  ;;  %v3876_v58 = vpop.eup %2888  ;;  %v812_v48 = vadd.f32 %v811_v29, %v810_v28  ;;  %v2790_v38 = vpack.i.bf16 %v2887_v8, %v2885_v21  ;;  %v788_v25 = vmul.f32 1.442695, %v664_v62 }
  0xa2   : > { %v881_v49 = vadd.f32 %v880_v20, %v879_v26  ;;  %v2891_v56 = vpop.eup %2890  ;;  %2908 = vpow2.f32 %v690_v57  ;;  %v648_v39 = vsub.f32 %v4614_v27, %v3712_v50  ;;  %v692_v22 = vmul.f32 1.442695, %v616_v17  ;;  %v4615_v26 = vld [vmem:[#allocation29_spill] sm:$0xff] }
  0xa3   : > { %v3882_v10 = vpop.eup %2892  ;;  %v813_v6 = vsel %vm465_vm0, %v2891_v56, 0.0  ;;  %2910 = vpow2.f32 %v754_v23  ;;  %v633_v14 = vsub.f32 %v4615_v26, %v3684_v63  ;;  %v790_v54 = vmul.f32 1.442695, %v665_v61 }
  0xa4   : > { %2747 = vxpose.xlu0.b32.cont [8/16] (narrow) %v2746_v15, 16  ;;  %v2895_v13 = vpop.eup %2894  ;;  %v814_v53 = vadd.f32 %v813_v6, %v812_v48  ;;  %v2750_v15 = vpack.i.bf16 %v3882_v10, %v3876_v58  ;;  %2912 = vpow2.f32 %v724_v11  ;;  %v756_v8 = vmul.f32 1.442695, %v648_v39 }
  0xa5   : > { %2789 = vxpose.xlu1.b32.cont [8/16] (narrow) %v2788_v33, 16  ;;  %v3889_v42 = vpop.eup %2896  ;;  %v882_v18 = vsel %vm465_vm0, %v2895_v13, 0.0  ;;  %v2792_v28 = vpack.i.bf16 %v2895_v13, %v2891_v56  ;;  %2914 = vpow2.f32 %v788_v25  ;;  %v726_v29 = vmul.f32 1.442695, %v633_v14  ;;  %v2952_v13 = vld [vmem:[%s3299_s28 + $0x170] sm:$0xff] }
  0xa6   : > { %v3892_v7 = vpop.eup %2898  ;;  %v883_v5 = vadd.f32 %v882_v18, %v881_v49  ;;  %2916 = vpow2.f32 %v692_v22  ;;  %v617_v33 = vsub.f32 %v2950_v0, %v3684_v63  ;;  %v649_v57 = vsub.f32 %v4616_v9, %v3712_v50  ;;  %v4618_v18 = vld [vmem:[#allocation31_spill] sm:$0xff]  ;;  %v2953_v0 = vld [vmem:[%s3299_s28 + $0x78] sm:$0xff] }
  0xa7   : > { %v2901_v21 = vpop.eup %2900  ;;  %v2752_v20 = vpack.i.bf16 %v3892_v7, %v3889_v42  ;;  %2918 = vpow2.f32 %v756_v8  ;;  %v634_v4 = vsub.f32 %v4617_v2, %v3684_v63  ;;  %v666_v6 = vsub.f32 %v3645_v60, %v3712_v50 }
  0xa8   : > { %2749 = vxpose.xlu0.b32.cont [9/16] (narrow) %v2748_v59, 16  ;;  %v815_v37 = vsel %vm465_vm0, %v2901_v21, 0.0  ;;  %v2903_v31 = vpop.eup %2902  ;;  %2920 = vpow2.f32 %v726_v29  ;;  %v694_v48 = vmul.f32 1.442695, %v617_v33  ;;  %v758_v23 = vmul.f32 1.442695, %v649_v57 }
  0xa9   : > { %2791 = vxpose.xlu1.b32.cont [9/16] (narrow) %v2790_v38, 16  ;;  %v816_v34 = vadd.f32 %v815_v37, %v814_v53  ;;  %v3909_v56 = vpop.eup %2904  ;;  %v884_v49 = vsel %vm465_vm0, %v2903_v31, 0.0  ;;  %v2794_v59 = vpack.i.bf16 %v2903_v31, %v2901_v21  ;;  %2922 = vpow2.f32 %v790_v54  ;;  %v948_v29 = vld [vmem:[%s3304_s4 + $0x70] sm:$0xff]  ;;  %v949_v31 = vld [vmem:[%s3304_s4 + $0x78] sm:$0xff] }
  0xaa   : > { %v3916_v62 = vpop.eup %2906  ;;  %2924 = vpow2.f32 %v694_v48  ;;  %v618_v17 = vsub.f32 %v2951_v44, %v3684_v63  ;;  %v650_v38 = vsub.f32 %v2952_v13, %v3712_v50  ;;  %v635_v11 = vsub.f32 %v4618_v18, %v3684_v63  ;;  %v980_v48 = vld [vmem:[%s3304_s4 + $0x170] sm:$0xff] }
  0xab   : > { %v885_v53 = vadd.f32 %v884_v49, %v883_v5  ;;  %v2754_v27 = vpack.i.bf16 %v3916_v62, %v3909_v56  ;;  %2926 = vpow2.f32 %v758_v23  ;;  %v728_v60 = vmul.f32 1.442695, %v634_v4  ;;  %v2954_v49 = vld [vmem:[%s3299_s28 + $0x178] sm:$0xff] }
  0xac   : > { %2751 = vxpose.xlu0.b32.cont [10/16] (narrow) %v2750_v15, 16  ;;  %v2909_v25 = vpop.eup %2908  ;;  %v792_v26 = vmul.f32 1.442695, %v666_v6  ;;  %v696_v14 = vmul.f32 1.442695, %v618_v17  ;;  %v667_v21 = vsub.f32 %v3648_v55, %v3712_v50  ;;  %v619_v33 = vsub.f32 %v2953_v0, %v3684_v63  ;;  %v981_v23 = vld [vmem:[%s3304_s4 + $0x178] sm:$0xff] }
  0xad   : > { %2793 = vxpose.xlu1.b32.cont [10/16] (narrow) %v2792_v28, 16  ;;  %v2911_v39 = vpop.eup %2910  ;;  %v817_v22 = vsel %vm465_vm0, %v2909_v25, 0.0  ;;  %2928 = vpow2.f32 %v728_v60  ;;  %v760_v37 = vmul.f32 1.442695, %v650_v38  ;;  %v730_v8 = vmul.f32 1.442695, %v635_v11 }
  0xae   : > { %v886_v15 = vsel %vm465_vm0, %v2911_v39, 0.0  ;;  %v2796_v28 = vpack.i.bf16 %v2911_v39, %v2909_v25  ;;  %v3930_v61 = vpop.eup %2912  ;;  %2930 = vpow2.f32 %v792_v26  ;;  %v818_v54 = vadd.f32 %v817_v22, %v816_v34 }
  0xaf   : > { %v3934_v5 = vpop.eup %2914  ;;  %2932 = vpow2.f32 %v696_v14  ;;  %v794_v55 = vmul.f32 1.442695, %v667_v21  ;;  %v887_v9 = vadd.f32 %v886_v15, %v885_v53  ;;  %v698_v4 = vmul.f32 1.442695, %v619_v33 }
  0xb0   : > { %2753 = vxpose.xlu0.b32.cont [11/16] (narrow) %v2752_v20, 16  ;;  %v2917_v20 = vpop.eup %2916  ;;  %v2756_v57 = vpack.i.bf16 %v3934_v5, %v3930_v61  ;;  %2934 = vpow2.f32 %v760_v37  ;;  %v2634_v6 = vpack.c.bf16 %v949_v31, %v948_v29  ;;  %v2666_v18 = vpack.c.bf16 %v981_v23, %v980_v48 }
  0xb1   : > { %2795 = vxpose.xlu1.b32.cont [11/16] (narrow) %v2794_v59, 16  ;;  %v651_v59 = vsub.f32 %v2954_v49, %v3712_v50  ;;  %v2919_v2 = vpop.eup %2918  ;;  %v819_v34 = vsel %vm465_vm0, %v2917_v20, 0.0  ;;  %2936 = vpow2.f32 %v730_v8  ;;  %v827_v49 = vsel %vm465_vm0, %v3734_v19, 0.0 }
  0xb2   : > { %v3945_v63 = vpop.eup %2920  ;;  %v888_v44 = vsel %vm465_vm0, %v2919_v2, 0.0  ;;  %v2798_v17 = vpack.i.bf16 %v2919_v2, %v2917_v20  ;;  %2938 = vpow2.f32 %v794_v55  ;;  %v820_v38 = vadd.f32 %v819_v34, %v818_v54  ;;  %2635 = vmatpush3.bf16.msra.mxu0 %v2634_v6  ;;  %2667 = vmatpush3.bf16.msra.mxu1 %v2666_v18 }
  0xb3   : > { %v3948_v13 = vpop.eup %2922  ;;  %2940 = vpow2.f32 %v698_v4  ;;  %v762_v50 = vmul.f32 1.442695, %v651_v59  ;;  %v896_v2 = vsel %vm465_vm0, %v3777_v3, 0.0  ;;  %v829_v34 = vsel %vm465_vm0, %v3747_v30, 0.0 }
  0xb4   : > { %2755 = vxpose.xlu0.b32.cont [12/16] (narrow) %v2754_v27, 16  ;;  %v2925_v11 = vpop.eup %2924  ;;  %v2758_v25 = vpack.i.bf16 %v3948_v13, %v3945_v63  ;;  %v889_v27 = vadd.f32 %v888_v44, %v887_v9  ;;  %v831_v19 = vsel %vm465_vm0, %v3765_v46, 0.0  ;;  %v900_v3 = vsel %vm465_vm0, %v3790_v40, 0.0 }
  0xb5   : > { %2797 = vxpose.xlu1.b32.cont [12/16] (narrow) %v2796_v28, 16  ;;  %v2927_v53 = vpop.eup %2926  ;;  %v821_v60 = vsel %vm465_vm0, %v2925_v11, 0.0  ;;  %2942 = vpow2.f32 %v762_v50  ;;  %v833_v30 = vsel %vm465_vm0, %v3771_v47, 0.0  ;;  %v904_v46 = vsel %vm465_vm0, %v3811_v1, 0.0 }
  0xb6   : > { %v890_v39 = vsel %vm465_vm0, %v2927_v53, 0.0  ;;  %v2800_v22 = vpack.i.bf16 %v2927_v53, %v2925_v11  ;;  %v822_v14 = vadd.f32 %v821_v60, %v820_v38  ;;  %v898_v38 = vsel %vm465_vm0, %v3781_v43, 0.0 }
  0xb7   : > { %v3954_v26 = vpop.eup %2928  ;;  %v891_v28 = vadd.f32 %v890_v39, %v889_v27  ;;  %v902_v53 = vsel %vm465_vm0, %v3800_v52, 0.0  ;;  %v835_v43 = vsel %vm465_vm0, %v3807_v12, 0.0  ;;  %v837_v39 = vsel %vm465_vm0, %v3823_v24, 0.0 }
  0xb8   : > { %2757 = vxpose.xlu0.b32.cont [13/16] (narrow) %v2756_v57, 16  ;;  %v3956_v21 = vpop.eup %2930  ;;  %v906_v47 = vsel %vm465_vm0, %v3826_v45, 0.0  ;;  %v908_v12 = vsel %vm465_vm0, %v3838_v51, 0.0  ;;  %v910_v24 = vsel %vm465_vm0, %v3852_v36, 0.0 }
  0xb9   : > { %2799 = vxpose.xlu1.b32.cont [13/16] (narrow) %v2798_v17, 16  ;;  %v2933_v15 = vpop.eup %2932  ;;  %v2760_v37 = vpack.i.bf16 %v3956_v21, %v3954_v26 }
  0xba   : > { %v2935_v8 = vpop.eup %2934  ;;  %v823_v29 = vsel %vm465_vm0, %v2933_v15, 0.0 }
  0xbb   : > { %v3961_v31 = vpop.eup %2936  ;;  %v892_v54 = vsel %vm465_vm0, %v2935_v8, 0.0  ;;  %v2802_v55 = vpack.i.bf16 %v2935_v8, %v2933_v15  ;;  %v824_v0 = vadd.f32 %v823_v29, %v822_v14  ;;  %v839_v14 = vsel %vm465_vm0, %v3835_v32, 0.0 }
  0xbc   : > { %2759 = vxpose.xlu0.b32.cont [14/16] (narrow) %v2758_v25, 16  ;;  %v3964_v33 = vpop.eup %2938  ;;  %v893_v9 = vadd.f32 %v892_v54, %v891_v28  ;;  %v841_v28 = vsel %vm465_vm0, %v3849_v35, 0.0  ;;  %v843_v8 = vsel %vm465_vm0, %v3861_v16, 0.0  ;;  %v912_v32 = vsel %vm465_vm0, %v3864_v41, 0.0 }
  0xbd   : > { %2801 = vxpose.xlu1.b32.cont [14/16] (narrow) %v2800_v22, 16  ;;  %v2941_v20 = vpop.eup %2940  ;;  %v2762_v57 = vpack.i.bf16 %v3964_v33, %v3961_v31  ;;  %v845_v54 = vsel %vm465_vm0, %v3876_v58, 0.0  ;;  %v914_v35 = vsel %vm465_vm0, %v3882_v10, 0.0  ;;  %v916_v16 = vsel %vm465_vm0, %v3892_v7, 0.0 }
  0xbe   : > { %v825_v59 = vsel %vm465_vm0, %v2941_v20, 0.0  ;;  %v918_v58 = vsel %vm465_vm0, %v3916_v62, 0.0 }
  0xbf   : > { %v2943_v48 = vpop.eup %2942  ;;  %v826_v23 = vadd.f32 %v825_v59, %v824_v0  ;;  %v847_v0 = vsel %vm465_vm0, %v3889_v42, 0.0  ;;  %v920_v42 = vsel %vm465_vm0, %v3934_v5, 0.0 }
  0xc0   : > { %2761 = vxpose.xlu0.b32.cont [15/16] (narrow) %v2760_v37, 16  ;;  %v894_v4 = vsel %vm465_vm0, %v2943_v48, 0.0  ;;  %v2804_v6 = vpack.i.bf16 %v2943_v48, %v2941_v20  ;;  %v853_v48 = vsel %vm465_vm0, %v3945_v63, 0.0  ;;  %v926_v63 = vsel %vm465_vm0, %v3964_v33, 0.0 }
  0xc1   : > { %2803 = vxpose.xlu1.b32.cont [15/16] (narrow) %v2802_v55, 16  ;;  %v895_v44 = vadd.f32 %v894_v4, %v893_v9  ;;  %v828_v17 = vadd.f32 %v827_v49, %v826_v23  ;;  %v849_v9 = vsel %vm465_vm0, %v3909_v56, 0.0  ;;  %v851_v49 = vsel %vm465_vm0, %v3930_v61, 0.0 }
  0xc2   : > { %v855_v56 = vsel %vm465_vm0, %v3954_v26, 0.0  ;;  %v857_v61 = vsel %vm465_vm0, %v3961_v31, 0.0  ;;  %v924_v4 = vsel %vm465_vm0, %v3956_v21, 0.0 }
  0xc3   : > { %v897_v50 = vadd.f32 %v896_v2, %v895_v44  ;;  %v830_v18 = vadd.f32 %v829_v34, %v828_v17  ;;  %v922_v2 = vsel %vm465_vm0, %v3948_v13, 0.0 }
  0xc4   : > { %2763 = vxpose.xlu0.b32.end [16/16] (narrow) %v2762_v57, 16 }
  0xc5   : > { %2805 = vxpose.xlu1.b32.end [16/16] (narrow) %v2804_v6, 16  ;;  %v899_v11 = vadd.f32 %v898_v38, %v897_v50  ;;  %v832_v25 = vadd.f32 %v831_v19, %v830_v18 }
  0xc7   : > { %v901_v27 = vadd.f32 %v900_v3, %v899_v11  ;;  %v834_v60 = vadd.f32 %v833_v30, %v832_v25 }
  0xc9   : > { %v903_v40 = vadd.f32 %v902_v53, %v901_v27  ;;  %v836_v22 = vadd.f32 %v835_v43, %v834_v60 }
  0xcb   : > { %v905_v52 = vadd.f32 %v904_v46, %v903_v40  ;;  %v838_v15 = vadd.f32 %v837_v39, %v836_v22 }
  0xcd   : > { %v907_v1 = vadd.f32 %v906_v47, %v905_v52  ;;  %v840_v37 = vadd.f32 %v839_v14, %v838_v15 }
  0xcf   : > { %v842_v45 = vadd.f32 %v841_v28, %v840_v37  ;;  %v909_v29 = vadd.f32 %v908_v12, %v907_v1 }
  0xd1   : > { %v844_v51 = vadd.f32 %v843_v8, %v842_v45  ;;  %v911_v55 = vadd.f32 %v910_v24, %v909_v29 }
  0xd3   : > { %v846_v36 = vadd.f32 %v845_v54, %v844_v51  ;;  %v913_v20 = vadd.f32 %v912_v32, %v911_v55 }
  0xd5   : > { %v848_v41 = vadd.f32 %v847_v0, %v846_v36  ;;  %v915_v57 = vadd.f32 %v914_v35, %v913_v20 }
  0xd7   : > { %v850_v10 = vadd.f32 %v849_v9, %v848_v41  ;;  %v917_v59 = vadd.f32 %v916_v16, %v915_v57 }
  0xd9   : > { %v852_v7 = vadd.f32 %v851_v49, %v850_v10  ;;  %v919_v23 = vadd.f32 %v918_v58, %v917_v59 }
  0xdb   : > { %v854_v62 = vadd.f32 %v853_v48, %v852_v7  ;;  %v921_v34 = vadd.f32 %v920_v42, %v919_v23 }
  0xdd   : > { %v856_v5 = vadd.f32 %v855_v56, %v854_v62  ;;  %v923_v6 = vadd.f32 %v922_v2, %v921_v34 }
  0xdf   : > { %v858_v44 = vadd.f32 %v857_v61, %v856_v5  ;;  %v925_v17 = vadd.f32 %v924_v4, %v923_v6 }
  0xe1   : > { %v859_v38 = vrot.slane %v858_v44, 4  ;;  %v927_v26 = vadd.f32 %v926_v63, %v925_v17 }
  0xe3   : > { %v860_v19 = vadd.f32 %v859_v38, %v858_v44  ;;  %v928_v50 = vrot.slane %v927_v26, 4 }
  0xe5   : > { %v861_v13 = vrot.slane %v860_v19, 2  ;;  %v929_v18 = vadd.f32 %v928_v50, %v927_v26 }
  0xe7   : > { %v862_v3 = vadd.f32 %v861_v13, %v860_v19  ;;  %v930_v30 = vrot.slane %v929_v18, 2 }
  0xe9   : > { %v863_v11 = vrot.slane %v862_v3, 1  ;;  %v931_v31 = vadd.f32 %v930_v30, %v929_v18 }
  0xeb   : > { %v864_v25 = vadd.f32 %v863_v11, %v862_v3  ;;  %v932_v53 = vrot.slane %v931_v31, 1 }
  0xed   : > { %2944 = vrcp.f32 %v864_v25  ;;  %v933_v21 = vadd.f32 %v932_v53, %v931_v31 }
  0xef   : > { %2946 = vrcp.f32 %v933_v21 }
  0xf7   : > { %v2945_v43 = vpop.eup %2944 }
  0xf8   : > { %1283 = vbcast.lane.b32.xlu1 %v2945_v43, 264  ;;  %1279 = vbcast.lane.b32.xlu0 %v2945_v43, 256 }
  0xf9   : > { %v2947_v33 = vpop.eup %2946 }
  0xfc   : > { %1286 = vbcast.lane.b32.xlu1 %v2947_v33, 256 }
 0x100   : > { %1290 = vbcast.lane.b32.xlu1 %v2947_v33, 264 }
 0x108   : > { %v2764_v27 = vpop.trf.xlu0 }
 0x109   : > { %v2765_v60 = vunpack.i.l.bf16 %v2764_v27  ;;  %v2768_v46 = vunpack.i.h.bf16 %v2764_v27  ;;  %v2806_v39 = vpop.trf.xlu1 }
 0x10a   : > { %v2807_v40 = vunpack.i.l.bf16 %v2806_v39  ;;  %v2810_v22 = vunpack.i.h.bf16 %v2806_v39 }
 0x10b   : > { %1126 = vmatprep.mubr.f32.mxu0 %v2765_v60  ;;  %1265 = vmatprep.mubr.f32.mxu1 %v2768_v46 }
 0x10c   : > { %v2769_v47 = vpop.trf.xlu0  ;;  %1127 = vmatmul.mubr.f32.vlgmr.msra.gmra.mrb[0].mxu0 %v2807_v40  ;;  %1266 = vmatmul.mubr.f32.vlgmr.msra.gmra.mrb[0].mxu1 %v2810_v22 }
 0x10d   : > { %v2770_v14 = vunpack.i.l.bf16 %v2769_v47  ;;  %v2773_v52 = vunpack.i.h.bf16 %v2769_v47  ;;  %v2811_v15 = vpop.trf.xlu1 }
 0x10e   : > { %v2812_v12 = vunpack.i.l.bf16 %v2811_v15  ;;  %v2815_v28 = vunpack.i.h.bf16 %v2811_v15 }
 0x10f   : > { %1131 = vmatprep.mubr.f32.mxu0 %v2770_v14  ;;  %1270 = vmatprep.mubr.f32.mxu1 %v2773_v52 }
 0x110   : > { %1132 = vmatmul.mubr.f32.gmra.mrb[2].mxu0 %v2812_v12  ;;  %1271 = vmatmul.mubr.f32.gmra.mrb[2].mxu1 %v2815_v28 }
 0x16a   : > { %v1284_v1 = vpop.permute.xlu1 %1283  ;;  %v1280_v24 = vpop.permute.xlu0 %1279 }
 0x16e   : > { %v1287_v37 = vpop.permute.xlu1 %1286 }
 0x172   : > { %v1291_v55 = vpop.permute.xlu1 %1290 }
 0x1df   : > { %v2468_v8 = vpop.f32.mrb[0].mxu0  ;;  %v2506_v45 = vpop.f32.mrb[0].mxu1 }
 0x1e0   : > { %v2469_v29 = vpop.f32.mrb[1].mxu0  ;;  %v2507_v32 = vpop.f32.mrb[1].mxu1 }
 0x1e1   : > { %v2470_v54 = vadd.f32 %v2469_v29, %v2468_v8  ;;  %v2508_v51 = vadd.f32 %v2507_v32, %v2506_v45 }
 0x1e3   : > { %v1294_v35 = vmul.f32 %v2508_v51, %v1287_v37  ;;  %v1292_v0 = vmul.f32 %v2470_v54, %v1280_v24  ;;  %v2471_v36 = vpop.f32.mrb[2].mxu0  ;;  %v2509_v20 = vpop.f32.mrb[2].mxu1 }
 0x1e4   : > { %v2472_v16 = vpop.f32.mrb[3].mxu0  ;;  %v2510_v9 = vpop.f32.mrb[3].mxu1 }
 0x1e5   : > { %1298 = vst.msk [vmem:[#allocation2 + $0x10] sm:$0xff] %vm465_vm0, %v1294_v35  ;;  %1296 = vst.msk [vmem:[#allocation2] sm:$0xff] %vm465_vm0, %v1292_v0  ;;  %v2473_v41 = vadd.f32 %v2472_v16, %v2471_v36  ;;  %v2511_v57 = vadd.f32 %v2510_v9, %v2509_v20 }
 0x1e7   : > { %v1293_v58 = vmul.f32 %v2473_v41, %v1284_v1  ;;  %v1295_v49 = vmul.f32 %v2511_v57, %v1291_v55 }
 0x1e9   : > { %1297 = vst.msk [vmem:[#allocation2 + $0x8] sm:$0xff] %vm465_vm0, %v1293_v58  ;;  %1299 = vst.msk [vmem:[#allocation2 + $0x18] sm:$0xff] %vm465_vm0, %v1295_v49 }
 0x1ea PF: > { %v4039_v10 = vld [vmem:[%s3306_s5 + $0x8] sm:$0xff]  ;;  %vm1332_vm1 = vcmask 130048   ;;  %v4042_v59 = vld [vmem:[%s3306_s5] sm:$0xff]  ;;  %v4059_v62 = vld [vmem:[%s3306_s5 + $0x90] sm:$0xff]  ;;  %s2427_s12 = sshll.u32 (%p3207_p6), %s3121_s14, 4  ;;  %s2435_s7 = sshll.u32 (%p3207_p6), %s3125_s15, 6 }
 0x1eb   : > { %v4045_v42 = vld [vmem:[%s3306_s5 + $0x88] sm:$0xff]  ;;  %v1336_v48 = vsel %vm1332_vm1, %v4039_v10, -inf  ;;  %v1333_v7 = vsel %vm1332_vm1, %v4042_v59, -inf  ;;  %v4052_v23 = vld [vmem:[%s3306_s5 + $0x80] sm:$0xff]  ;;  %v4062_v34 = vld [vmem:[%s3306_s5 + $0x10] sm:$0xff]  ;;  %v1387_v61 = vsel %vm1332_vm1, %v4059_v62, -inf  ;;  %s2117_s23 = sadd.s32 (%p3207_p6), %s2435_s7, %s2427_s12 }
 0x1ec   : > { %1337 = vmax.xlane.f32.xlu1 %v1336_v48  ;;  %1334 = vmax.xlane.f32.xlu0 %v1333_v7  ;;  %v1384_v56 = vsel %vm1332_vm1, %v4045_v42, -inf  ;;  %v1381_v2 = vsel %vm1332_vm1, %v4052_v23, -inf  ;;  %v1339_v4 = vsel %vm1332_vm1, %v4062_v34, -inf  ;;  %v4069_v5 = vld [vmem:[%s3306_s5 + $0x98] sm:$0xff]  ;;  %v4079_v17 = vld [vmem:[%s3306_s5 + $0xa0] sm:$0xff]  ;;  %v4089_v50 = vld [vmem:[%s3306_s5 + $0xa8] sm:$0xff] }
 0x1ed   : > { %v4072_v6 = vld [vmem:[%s3306_s5 + $0x18] sm:$0xff]  ;;  %v1390_v63 = vsel %vm1332_vm1, %v4069_v5, -inf  ;;  %v4082_v38 = vld [vmem:[%s3306_s5 + $0x20] sm:$0xff]  ;;  %v1393_v26 = vsel %vm1332_vm1, %v4079_v17, -inf  ;;  %v4092_v13 = vld [vmem:[%s3306_s5 + $0x28] sm:$0xff]  ;;  %v1396_v18 = vsel %vm1332_vm1, %v4089_v50, -inf }
 0x1ee   : > { %v1342_v44 = vsel %vm1332_vm1, %v4072_v6, -inf  ;;  %v1345_v19 = vsel %vm1332_vm1, %v4082_v38, -inf  ;;  %v1348_v3 = vsel %vm1332_vm1, %v4092_v13, -inf  ;;  %v4099_v30 = vld [vmem:[%s3306_s5 + $0xb0] sm:$0xff]  ;;  %v4109_v53 = vld [vmem:[%s3306_s5 + $0xb8] sm:$0xff]  ;;  %v1621_v43 = vld [vmem:[#allocation2] sm:$0xff] }
 0x1ef   : > { %v4102_v11 = vld [vmem:[%s3306_s5 + $0x30] sm:$0xff]  ;;  %v1399_v31 = vsel %vm1332_vm1, %v4099_v30, -inf  ;;  %v4112_v21 = vld [vmem:[%s3306_s5 + $0x38] sm:$0xff]  ;;  %v1402_v27 = vsel %vm1332_vm1, %v4109_v53, -inf  ;;  %v4119_v39 = vld [vmem:[%s3306_s5 + $0xc0] sm:$0xff]  ;;  %s2429_s8 = sshll.u32 (%p3207_p6), %s2117_s23, 3 }
 0x1f0   : > { %1385 = vmax.xlane.f32.xlu1 %v1384_v56  ;;  %1382 = vmax.xlane.f32.xlu0 %v1381_v2  ;;  %v1351_v25 = vsel %vm1332_vm1, %v4102_v11, -inf  ;;  %v1622_v33 = vld [vmem:[#allocation2 + $0x8] sm:$0xff]  ;;  %v1354_v60 = vsel %vm1332_vm1, %v4112_v21, -inf  ;;  %v4122_v40 = vld [vmem:[%s3306_s5 + $0x40] sm:$0xff]  ;;  %v1623_v22 = vld [vmem:[#allocation2 + $0x10] sm:$0xff]  ;;  %v1405_v14 = vsel %vm1332_vm1, %v4119_v39, -inf  ;;  %s4449_s11 = scalar_lea.vmem (%p3207_p6), %s4530_s3, %s2429_s8 }
 0x1f1   : > { %v2668_v46 = vpack.c.bf16 %v1622_v33, %v1621_v43  ;;  %v1624_v47 = vld [vmem:[#allocation2 + $0x18] sm:$0xff]  ;;  %v1357_v52 = vsel %vm1332_vm1, %v4122_v40, -inf  ;;  %v4129_v12 = vld [vmem:[%s3306_s5 + $0xc8] sm:$0xff]  ;;  %v4139_v24 = vld [vmem:[%s3306_s5 + $0xd0] sm:$0xff] }
 0x1f2   : > { %v2672_v15 = vpack.c.bf16 %v1624_v47, %v1623_v22  ;;  %v4132_v28 = vld [vmem:[%s3306_s5 + $0x48] sm:$0xff]  ;;  %v1408_v1 = vsel %vm1332_vm1, %v4129_v12, -inf  ;;  %v4142_v8 = vld [vmem:[%s3306_s5 + $0x50] sm:$0xff]  ;;  %v1411_v45 = vsel %vm1332_vm1, %v4139_v24, -inf  ;;  %v4149_v32 = vld [vmem:[%s3306_s5 + $0xd8] sm:$0xff] }
 0x1f3   : > { %2669 = vmatprep.subr.bf16.mxu0 %v2668_v46  ;;  %v1360_v37 = vsel %vm1332_vm1, %v4132_v28, -inf  ;;  %v1363_v29 = vsel %vm1332_vm1, %v4142_v8, -inf  ;;  %v4152_v54 = vld [vmem:[%s3306_s5 + $0x58] sm:$0xff]  ;;  %v1414_v51 = vsel %vm1332_vm1, %v4149_v32, -inf  ;;  %v4159_v35 = vld [vmem:[%s3306_s5 + $0xe0] sm:$0xff]  ;;  %v4169_v16 = vld [vmem:[%s3306_s5 + $0xe8] sm:$0xff] }
 0x1f4   : > { %1388 = vmax.xlane.f32.xlu1 %v1387_v61  ;;  %1340 = vmax.xlane.f32.xlu0 %v1339_v4  ;;  %v1366_v55 = vsel %vm1332_vm1, %v4152_v54, -inf  ;;  %v4162_v0 = vld [vmem:[%s3306_s5 + $0x60] sm:$0xff]  ;;  %v1417_v36 = vsel %vm1332_vm1, %v4159_v35, -inf  ;;  %v4172_v9 = vld [vmem:[%s3306_s5 + $0x68] sm:$0xff]  ;;  %v1420_v41 = vsel %vm1332_vm1, %v4169_v16, -inf  ;;  %v4179_v58 = vld [vmem:[%s3306_s5 + $0xf0] sm:$0xff] }
 0x1f5   : > { %2671 = vmatpush3.bf16.msra.mxu0 %v2668_v46  ;;  %2673 = vmatprep.subr.bf16.mxu1 %v2672_v15  ;;  %v1369_v20 = vsel %vm1332_vm1, %v4162_v0, -inf  ;;  %v1372_v57 = vsel %vm1332_vm1, %v4172_v9, -inf  ;;  %v4182_v49 = vld [vmem:[%s3306_s5 + $0x70] sm:$0xff]  ;;  %v1423_v48 = vsel %vm1332_vm1, %v4179_v58, -inf  ;;  %v4189_v56 = vld [vmem:[%s3306_s5 + $0xf8] sm:$0xff] }
 0x1f6   : > { %2675 = vmatpush3.bf16.msra.mxu1 %v2672_v15  ;;  %v1375_v7 = vsel %vm1332_vm1, %v4182_v49, -inf  ;;  %v4192_v2 = vld [vmem:[%s3306_s5 + $0x78] sm:$0xff]  ;;  %v1426_v61 = vsel %vm1332_vm1, %v4189_v56, -inf }
 0x1f7   : > { %v1378_v4 = vsel %vm1332_vm1, %v4192_v2, -inf }
 0x1f8   : > { %1391 = vmax.xlane.f32.xlu1 %v1390_v63  ;;  %1343 = vmax.xlane.f32.xlu0 %v1342_v44 }
 0x1fc   : > { %1394 = vmax.xlane.f32.xlu1 %v1393_v26  ;;  %1346 = vmax.xlane.f32.xlu0 %v1345_v19 }
 0x200   : > { %1397 = vmax.xlane.f32.xlu1 %v1396_v18  ;;  %1349 = vmax.xlane.f32.xlu0 %v1348_v3 }
 0x204   : > { %1400 = vmax.xlane.f32.xlu1 %v1399_v31  ;;  %1352 = vmax.xlane.f32.xlu0 %v1351_v25 }
 0x208   : > { %1403 = vmax.xlane.f32.xlu1 %v1402_v27  ;;  %1355 = vmax.xlane.f32.xlu0 %v1354_v60 }
 0x20c   : > { %1406 = vmax.xlane.f32.xlu1 %v1405_v14  ;;  %1358 = vmax.xlane.f32.xlu0 %v1357_v52 }
 0x210   : > { %1409 = vmax.xlane.f32.xlu1 %v1408_v1  ;;  %1361 = vmax.xlane.f32.xlu0 %v1360_v37 }
 0x214   : > { %1412 = vmax.xlane.f32.xlu1 %v1411_v45  ;;  %1364 = vmax.xlane.f32.xlu0 %v1363_v29 }
 0x218   : > { %1415 = vmax.xlane.f32.xlu1 %v1414_v51  ;;  %1367 = vmax.xlane.f32.xlu0 %v1366_v55 }
 0x21c   : > { %1418 = vmax.xlane.f32.xlu1 %v1417_v36  ;;  %1370 = vmax.xlane.f32.xlu0 %v1369_v20 }
 0x220   : > { %1421 = vmax.xlane.f32.xlu1 %v1420_v41  ;;  %1373 = vmax.xlane.f32.xlu0 %v1372_v57 }
 0x224   : > { %1424 = vmax.xlane.f32.xlu1 %v1423_v48  ;;  %1376 = vmax.xlane.f32.xlu0 %v1375_v7 }
 0x228   : > { %1427 = vmax.xlane.f32.xlu1 %v1426_v61  ;;  %1379 = vmax.xlane.f32.xlu0 %v1378_v4 }
 0x279   : > { %v1338_v63 = vpop.xlane.xlu1 %1337  ;;  %v1335_v44 = vpop.xlane.xlu0 %1334 }
 0x27a   : > { %v1430_v26 = vsub.f32 %v4039_v10, %v1338_v63  ;;  %v1429_v19 = vsub.f32 %v4042_v59, %v1335_v44 }
 0x27c   : > { %v1463_v18 = vmul.f32 1.442695, %v1430_v26  ;;  %v1461_v3 = vmul.f32 1.442695, %v1429_v19 }
 0x27d   : > { %v1386_v31 = vpop.xlane.xlu1 %1385  ;;  %v1383_v25 = vpop.xlane.xlu0 %1382 }
 0x27e   : > { %2955 = vpow2.f32 %v1463_v18  ;;  %v1446_v43 = vsub.f32 %v4045_v42, %v1386_v31  ;;  %v1445_v33 = vsub.f32 %v4052_v23, %v1383_v25 }
 0x27f   : > { %2957 = vpow2.f32 %v1461_v3 }
 0x280   : > { %v1495_v27 = vmul.f32 1.442695, %v1446_v43  ;;  %v1493_v60 = vmul.f32 1.442695, %v1445_v33 }
 0x281   : > { %v1389_v46 = vpop.xlane.xlu1 %1388  ;;  %v1341_v22 = vpop.xlane.xlu0 %1340 }
 0x282   : > { %2959 = vpow2.f32 %v1495_v27  ;;  %v1447_v47 = vsub.f32 %v4059_v62, %v1389_v46  ;;  %v1431_v10 = vsub.f32 %v4062_v34, %v1341_v22 }
 0x283   : > { %2961 = vpow2.f32 %v1493_v60 }
 0x284   : > { %v1497_v59 = vmul.f32 1.442695, %v1447_v47  ;;  %v1465_v14 = vmul.f32 1.442695, %v1431_v10 }
 0x285   : > { %v1392_v52 = vpop.xlane.xlu1 %1391  ;;  %v1344_v15 = vpop.xlane.xlu0 %1343 }
 0x286   : > { %2963 = vpow2.f32 %v1497_v59  ;;  %v1448_v42 = vsub.f32 %v4069_v5, %v1392_v52  ;;  %v1432_v23 = vsub.f32 %v4072_v6, %v1344_v15 }
 0x287   : > { %2965 = vpow2.f32 %v1465_v14 }
 0x288   : > { %v2956_v1 = vpop.eup %2955  ;;  %v1499_v37 = vmul.f32 1.442695, %v1448_v42  ;;  %v1467_v45 = vmul.f32 1.442695, %v1432_v23 }
 0x289   : > { %v2958_v29 = vpop.eup %2957  ;;  %v1395_v51 = vpop.xlane.xlu1 %1394  ;;  %v1528_v62 = vsel %vm1332_vm1, %v2956_v1, 0.0 }
 0x28a   : > { %v1347_v55 = vpop.xlane.xlu0 %1346  ;;  %2967 = vpow2.f32 %v1499_v37  ;;  %v1449_v34 = vsub.f32 %v4079_v17, %v1395_v51  ;;  %2552 = vmatprep.mubr.msk.f32.mxu0 %vm1332_vm1, %v2958_v29  ;;  %1529 = vadd.xlane.f32.xlu1 %v1528_v62  ;;  %v1525_v5 = vsel %vm1332_vm1, %v2958_v29, 0.0 }
 0x28b   : > { %v1433_v36 = vsub.f32 %v4082_v38, %v1347_v55  ;;  %2969 = vpow2.f32 %v1467_v45  ;;  %2553 = vmatmul.mubr.msk.f32.vlgmr.msra.gmra.mrb[0].mxu0 %vm1332_vm1, %v2956_v1  ;;  %1526 = vadd.xlane.f32.xlu0 %v1525_v5 }
 0x28c   : > { %v4212_v6 = vpop.eup %2959  ;;  %v1501_v20 = vmul.f32 1.442695, %v1449_v34 }
 0x28d   : > { %v1469_v41 = vmul.f32 1.442695, %v1433_v36  ;;  %v4214_v57 = vpop.eup %2961  ;;  %v1398_v48 = vpop.xlane.xlu1 %1397 }
 0x28e   : > { %v1350_v7 = vpop.xlane.xlu0 %1349  ;;  %2971 = vpow2.f32 %v1501_v20  ;;  %v1450_v17 = vsub.f32 %v4089_v50, %v1398_v48  ;;  %2580 = vmatprep.mubr.msk.f32.mxu1 %vm1332_vm1, %v4214_v57 }
 0x28f   : > { %v1434_v38 = vsub.f32 %v4092_v13, %v1350_v7  ;;  %2973 = vpow2.f32 %v1469_v41  ;;  %2581 = vmatmul.mubr.msk.f32.vlgmr.msra.gmra.mrb[0].mxu1 %vm1332_vm1, %v4212_v6 }
 0x290   : > { %v4222_v61 = vpop.eup %2963  ;;  %v1503_v4 = vmul.f32 1.442695, %v1450_v17 }
 0x291   : > { %v1471_v63 = vmul.f32 1.442695, %v1434_v38  ;;  %v2966_v44 = vpop.eup %2965  ;;  %v1401_v26 = vpop.xlane.xlu1 %1400  ;;  %2583 = vmatprep.mubr.msk.f32.mxu1 %vm1332_vm1, %v4222_v61 }
 0x292   : > { %v1353_v19 = vpop.xlane.xlu0 %1352  ;;  %2975 = vpow2.f32 %v1503_v4  ;;  %v1451_v50 = vsub.f32 %v4099_v30, %v1401_v26  ;;  %2555 = vmatprep.mubr.msk.f32.mxu0 %vm1332_vm1, %v2966_v44  ;;  %v1531_v18 = vsel %vm1332_vm1, %v2966_v44, 0.0 }
 0x293   : > { %v1435_v13 = vsub.f32 %v4102_v11, %v1353_v19  ;;  %2977 = vpow2.f32 %v1471_v63  ;;  %1532 = vadd.xlane.f32.xlu0 %v1531_v18 }
 0x294   : > { %v4230_v3 = vpop.eup %2967  ;;  %v1505_v31 = vmul.f32 1.442695, %v1451_v50 }
 0x295   : > { %v1473_v25 = vmul.f32 1.442695, %v1435_v13  ;;  %v2970_v43 = vpop.eup %2969  ;;  %v1404_v33 = vpop.xlane.xlu1 %1403  ;;  %2584 = vmatmul.mubr.msk.f32.gmra.mrb[2].mxu1 %vm1332_vm1, %v4230_v3 }
 0x296   : > { %v1356_v27 = vpop.xlane.xlu0 %1355  ;;  %2979 = vpow2.f32 %v1505_v31  ;;  %v1452_v30 = vsub.f32 %v4109_v53, %v1404_v33  ;;  %2556 = vmatmul.mubr.msk.f32.gmra.mrb[2].mxu0 %vm1332_vm1, %v2970_v43  ;;  %v1534_v60 = vsel %vm1332_vm1, %v2970_v43, 0.0 }
 0x297   : > { %v1436_v11 = vsub.f32 %v4112_v21, %v1356_v27  ;;  %2981 = vpow2.f32 %v1473_v25  ;;  %1535 = vadd.xlane.f32.xlu1 %v1534_v60 }
 0x298   : > { %v4238_v46 = vpop.eup %2971  ;;  %v1507_v22 = vmul.f32 1.442695, %v1452_v30 }
 0x299   : > { %v1475_v47 = vmul.f32 1.442695, %v1436_v11  ;;  %v2974_v10 = vpop.eup %2973  ;;  %v1407_v59 = vpop.xlane.xlu1 %1406  ;;  %2586 = vmatprep.mubr.msk.f32.mxu1 %vm1332_vm1, %v4238_v46 }
 0x29a   : > { %v1359_v14 = vpop.xlane.xlu0 %1358  ;;  %2983 = vpow2.f32 %v1507_v22  ;;  %v1453_v53 = vsub.f32 %v4119_v39, %v1407_v59  ;;  %2558 = vmatprep.mubr.msk.f32.mxu0 %vm1332_vm1, %v2974_v10  ;;  %v1537_v52 = vsel %vm1332_vm1, %v2974_v10, 0.0 }
 0x29b   : > { %v1437_v21 = vsub.f32 %v4122_v40, %v1359_v14  ;;  %2985 = vpow2.f32 %v1475_v47  ;;  %1538 = vadd.xlane.f32.xlu0 %v1537_v52 }
 0x29c   : > { %v4246_v15 = vpop.eup %2975  ;;  %v1509_v42 = vmul.f32 1.442695, %v1453_v53 }
 0x29d   : > { %v1477_v23 = vmul.f32 1.442695, %v1437_v21  ;;  %v2978_v1 = vpop.eup %2977  ;;  %v1410_v37 = vpop.xlane.xlu1 %1409  ;;  %2587 = vmatmul.mubr.msk.f32.gmra.mrb[4].mxu1 %vm1332_vm1, %v4246_v15 }
 0x29e   : > { %v1362_v45 = vpop.xlane.xlu0 %1361  ;;  %2987 = vpow2.f32 %v1509_v42  ;;  %v1454_v39 = vsub.f32 %v4129_v12, %v1410_v37  ;;  %2559 = vmatmul.mubr.msk.f32.gmra.mrb[4].mxu0 %vm1332_vm1, %v2978_v1  ;;  %v1540_v29 = vsel %vm1332_vm1, %v2978_v1, 0.0 }
 0x29f   : > { %v1438_v40 = vsub.f32 %v4132_v28, %v1362_v45  ;;  %2989 = vpow2.f32 %v1477_v23  ;;  %1541 = vadd.xlane.f32.xlu1 %v1540_v29 }
 0x2a0   : > { %v4254_v51 = vpop.eup %2979  ;;  %v1511_v55 = vmul.f32 1.442695, %v1454_v39 }
 0x2a1   : > { %v1479_v62 = vmul.f32 1.442695, %v1438_v40  ;;  %v2982_v34 = vpop.eup %2981  ;;  %v1413_v36 = vpop.xlane.xlu1 %1412  ;;  %2589 = vmatprep.mubr.msk.f32.mxu1 %vm1332_vm1, %v4254_v51 }
 0x2a2   : > { %v1365_v5 = vpop.xlane.xlu0 %1364  ;;  %2991 = vpow2.f32 %v1511_v55  ;;  %v1455_v12 = vsub.f32 %v4139_v24, %v1413_v36  ;;  %2561 = vmatprep.mubr.msk.f32.mxu0 %vm1332_vm1, %v2982_v34  ;;  %v1543_v20 = vsel %vm1332_vm1, %v2982_v34, 0.0 }
 0x2a3   : > { %v1439_v28 = vsub.f32 %v4142_v8, %v1365_v5  ;;  %2993 = vpow2.f32 %v1479_v62  ;;  %1544 = vadd.xlane.f32.xlu0 %v1543_v20 }
 0x2a4   : > { %v4262_v41 = vpop.eup %2983  ;;  %v1513_v48 = vmul.f32 1.442695, %v1455_v12 }
 0x2a5   : > { %v1481_v7 = vmul.f32 1.442695, %v1439_v28  ;;  %v2986_v17 = vpop.eup %2985  ;;  %v1416_v38 = vpop.xlane.xlu1 %1415  ;;  %2590 = vmatmul.mubr.msk.f32.gmra.mrb[6].mxu1 %vm1332_vm1, %v4262_v41 }
 0x2a6   : > { %v1368_v4 = vpop.xlane.xlu0 %1367  ;;  %2995 = vpow2.f32 %v1513_v48  ;;  %v1456_v24 = vsub.f32 %v4149_v32, %v1416_v38  ;;  %2562 = vmatmul.mubr.msk.f32.gmra.mrb[6].mxu0 %vm1332_vm1, %v2986_v17  ;;  %v1546_v63 = vsel %vm1332_vm1, %v2986_v17, 0.0  ;;  %v1579_v38 = vsel %vm1332_vm1, %v4222_v61, 0.0 }
 0x2a7   : > { %v1440_v8 = vsub.f32 %v4152_v54, %v1368_v4  ;;  %2997 = vpow2.f32 %v1481_v7  ;;  %1547 = vadd.xlane.f32.xlu1 %v1546_v63  ;;  %v1573_v7 = vsel %vm1332_vm1, %v4214_v57, 0.0  ;;  %v1576_v4 = vsel %vm1332_vm1, %v4212_v6, 0.0 }
 0x2a8   : > { %v4270_v44 = vpop.eup %2987  ;;  %v1515_v26 = vmul.f32 1.442695, %v1456_v24  ;;  %v1585_v24 = vsel %vm1332_vm1, %v4238_v46, 0.0  ;;  %v1591_v57 = vsel %vm1332_vm1, %v4254_v51, 0.0  ;;  %v1588_v63 = vsel %vm1332_vm1, %v4246_v15, 0.0 }
 0x2a9   : > { %v1483_v19 = vmul.f32 1.442695, %v1440_v8  ;;  %v2990_v50 = vpop.eup %2989  ;;  %v1419_v13 = vpop.xlane.xlu1 %1418  ;;  %2592 = vmatprep.mubr.msk.f32.mxu1 %vm1332_vm1, %v4270_v44  ;;  %v1582_v8 = vsel %vm1332_vm1, %v4230_v3, 0.0  ;;  %v1597_v6 = vsel %vm1332_vm1, %v4270_v44, 0.0  ;;  %v1594_v61 = vsel %vm1332_vm1, %v4262_v41, 0.0 }
 0x2aa   : > { %v1371_v18 = vpop.xlane.xlu0 %1370  ;;  %2999 = vpow2.f32 %v1515_v26  ;;  %v1457_v32 = vsub.f32 %v4159_v35, %v1419_v13  ;;  %2564 = vmatprep.mubr.msk.f32.mxu0 %vm1332_vm1, %v2990_v50  ;;  %v1549_v31 = vsel %vm1332_vm1, %v2990_v50, 0.0 }
 0x2ab   : > { %v1441_v54 = vsub.f32 %v4162_v0, %v1371_v18  ;;  %3001 = vpow2.f32 %v1483_v19  ;;  %1550 = vadd.xlane.f32.xlu0 %v1549_v31 }
 0x2ac   : > { %v4278_v25 = vpop.eup %2991  ;;  %v1517_v43 = vmul.f32 1.442695, %v1457_v32 }
 0x2ad   : > { %v1485_v33 = vmul.f32 1.442695, %v1441_v54  ;;  %v2994_v27 = vpop.eup %2993  ;;  %v1422_v30 = vpop.xlane.xlu1 %1421  ;;  %2593 = vmatmul.mubr.msk.f32.gmra.mrb[8].mxu1 %vm1332_vm1, %v4278_v25  ;;  %v1600_v46 = vsel %vm1332_vm1, %v4278_v25, 0.0 }
 0x2ae   : > { %v1374_v11 = vpop.xlane.xlu0 %1373  ;;  %3003 = vpow2.f32 %v1517_v43  ;;  %v1458_v35 = vsub.f32 %v4169_v16, %v1422_v30  ;;  %2565 = vmatmul.mubr.msk.f32.gmra.mrb[8].mxu0 %vm1332_vm1, %v2994_v27  ;;  %v1552_v60 = vsel %vm1332_vm1, %v2994_v27, 0.0 }
 0x2af   : > { %v1442_v0 = vsub.f32 %v4172_v9, %v1374_v11  ;;  %3005 = vpow2.f32 %v1485_v33  ;;  %1553 = vadd.xlane.f32.xlu1 %v1552_v60 }
 0x2b0   : > { %v4286_v22 = vpop.eup %2995  ;;  %v1519_v47 = vmul.f32 1.442695, %v1458_v35 }
 0x2b1   : > { %v1487_v10 = vmul.f32 1.442695, %v1442_v0  ;;  %v2998_v59 = vpop.eup %2997  ;;  %v1425_v14 = vpop.xlane.xlu1 %1424  ;;  %2595 = vmatprep.mubr.msk.f32.mxu1 %vm1332_vm1, %v4286_v22  ;;  %v1603_v3 = vsel %vm1332_vm1, %v4286_v22, 0.0 }
 0x2b2   : > { %v1377_v53 = vpop.xlane.xlu0 %1376  ;;  %3007 = vpow2.f32 %v1519_v47  ;;  %v1459_v16 = vsub.f32 %v4179_v58, %v1425_v14  ;;  %2567 = vmatprep.mubr.msk.f32.mxu0 %vm1332_vm1, %v2998_v59  ;;  %v1555_v21 = vsel %vm1332_vm1, %v2998_v59, 0.0 }
 0x2b3   : > { %v1443_v9 = vsub.f32 %v4182_v49, %v1377_v53  ;;  %3009 = vpow2.f32 %v1487_v10  ;;  %1556 = vadd.xlane.f32.xlu0 %v1555_v21 }
 0x2b4   : > { %v4294_v52 = vpop.eup %2999  ;;  %v1521_v42 = vmul.f32 1.442695, %v1459_v16 }
 0x2b5   : > { %v1489_v23 = vmul.f32 1.442695, %v1443_v9  ;;  %v3002_v1 = vpop.eup %3001  ;;  %v1428_v37 = vpop.xlane.xlu1 %1427  ;;  %2596 = vmatmul.mubr.msk.f32.gmra.mrb[10].mxu1 %vm1332_vm1, %v4294_v52  ;;  %v1606_v51 = vsel %vm1332_vm1, %v4294_v52, 0.0 }
 0x2b6   : > { %v1380_v45 = vpop.xlane.xlu0 %1379  ;;  %3011 = vpow2.f32 %v1521_v42  ;;  %v1460_v58 = vsub.f32 %v4189_v56, %v1428_v37  ;;  %2568 = vmatmul.mubr.msk.f32.gmra.mrb[10].mxu0 %vm1332_vm1, %v3002_v1  ;;  %v1558_v39 = vsel %vm1332_vm1, %v3002_v1, 0.0 }
 0x2b7   : > { %v1444_v49 = vsub.f32 %v4192_v2, %v1380_v45  ;;  %3013 = vpow2.f32 %v1489_v23  ;;  %1559 = vadd.xlane.f32.xlu1 %v1558_v39 }
 0x2b8   : > { %v3004_v40 = vpop.eup %3003  ;;  %v1523_v29 = vmul.f32 1.442695, %v1460_v58 }
 0x2b9   : > { %v1491_v55 = vmul.f32 1.442695, %v1444_v49  ;;  %v3006_v62 = vpop.eup %3005  ;;  %2598 = vmatprep.mubr.msk.f32.mxu1 %vm1332_vm1, %v3004_v40  ;;  %v1609_v15 = vsel %vm1332_vm1, %v3004_v40, 0.0 }
 0x2ba   : > { %3015 = vpow2.f32 %v1523_v29  ;;  %2570 = vmatprep.mubr.msk.f32.mxu0 %vm1332_vm1, %v3006_v62  ;;  %v1561_v34 = vsel %vm1332_vm1, %v3006_v62, 0.0 }
 0x2bb   : > { %3017 = vpow2.f32 %v1491_v55  ;;  %1562 = vadd.xlane.f32.xlu0 %v1561_v34 }
 0x2bc   : > { %v3008_v56 = vpop.eup %3007 }
 0x2bd   : > { %v3010_v36 = vpop.eup %3009  ;;  %2599 = vmatmul.mubr.msk.f32.gmra.mrb[12].mxu1 %vm1332_vm1, %v3008_v56  ;;  %v1612_v41 = vsel %vm1332_vm1, %v3008_v56, 0.0 }
 0x2be   : > { %2571 = vmatmul.mubr.msk.f32.gmra.mrb[12].mxu0 %vm1332_vm1, %v3010_v36  ;;  %v1564_v2 = vsel %vm1332_vm1, %v3010_v36, 0.0 }
 0x2bf   : > { %1565 = vadd.xlane.f32.xlu1 %v1564_v2 }
 0x2c0   : > { %v3012_v5 = vpop.eup %3011 }
 0x2c1   : > { %v3014_v12 = vpop.eup %3013  ;;  %2601 = vmatprep.mubr.msk.f32.mxu1 %vm1332_vm1, %v3012_v5  ;;  %v1615_v44 = vsel %vm1332_vm1, %v3012_v5, 0.0 }
 0x2c2   : > { %2573 = vmatprep.mubr.msk.f32.mxu0 %vm1332_vm1, %v3014_v12  ;;  %v1567_v28 = vsel %vm1332_vm1, %v3014_v12, 0.0 }
 0x2c3   : > { %1568 = vadd.xlane.f32.xlu0 %v1567_v28 }
 0x2c4   : > { %v3016_v20 = vpop.eup %3015 }
 0x2c5   : > { %v3018_v48 = vpop.eup %3017  ;;  %2602 = vmatmul.mubr.msk.f32.gmra.mrb[14].mxu1 %vm1332_vm1, %v3016_v20  ;;  %v1618_v26 = vsel %vm1332_vm1, %v3016_v20, 0.0 }
 0x2c6   : > { %2574 = vmatmul.mubr.msk.f32.gmra.mrb[14].mxu0 %vm1332_vm1, %v3018_v48  ;;  %v1570_v17 = vsel %vm1332_vm1, %v3018_v48, 0.0 }
 0x2c7   : > { %1574 = vadd.xlane.f32.xlu0 %v1573_v7  ;;  %1571 = vadd.xlane.f32.xlu1 %v1570_v17 }
 0x2cb   : > { %1580 = vadd.xlane.f32.xlu0 %v1579_v38  ;;  %1577 = vadd.xlane.f32.xlu1 %v1576_v4 }
 0x2cf   : > { %1586 = vadd.xlane.f32.xlu0 %v1585_v24  ;;  %1583 = vadd.xlane.f32.xlu1 %v1582_v8 }
 0x2d3   : > { %1592 = vadd.xlane.f32.xlu0 %v1591_v57  ;;  %1589 = vadd.xlane.f32.xlu1 %v1588_v63 }
 0x2d7   : > { %1598 = vadd.xlane.f32.xlu0 %v1597_v6  ;;  %1595 = vadd.xlane.f32.xlu1 %v1594_v61 }
 0x2db   : > { %1604 = vadd.xlane.f32.xlu0 %v1603_v3  ;;  %1601 = vadd.xlane.f32.xlu1 %v1600_v46 }
 0x2df   : > { %1610 = vadd.xlane.f32.xlu0 %v1609_v15  ;;  %1607 = vadd.xlane.f32.xlu1 %v1606_v51 }
 0x2e3   : > { %1616 = vadd.xlane.f32.xlu0 %v1615_v44  ;;  %1613 = vadd.xlane.f32.xlu1 %v1612_v41 }
 0x2e7   : > { %1619 = vadd.xlane.f32.xlu1 %v1618_v26 }
 0x317   : > { %v1530_v50 = vpop.xlane.xlu1 %1529 }
 0x318   : > { %v1527_v19 = vpop.xlane.xlu0 %1526  ;;  %3019 = vrcp.f32 %v1530_v50 }
 0x319   : > { %3021 = vrcp.f32 %v1527_v19 }
 0x320   : > { %v1533_v13 = vpop.xlane.xlu0 %1532 }
 0x322   : > { %v3020_v14 = vpop.eup %3019 }
 0x323   : > { %v3022_v16 = vpop.eup %3021 }
 0x324   : > { %v1536_v18 = vpop.xlane.xlu1 %1535 }
 0x328   : > { %v1539_v32 = vpop.xlane.xlu0 %1538 }
 0x32c   : > { %v1542_v54 = vpop.xlane.xlu1 %1541 }
 0x330   : > { %v4342_v31 = vpop.xlane.xlu0 %1544 }
 0x334   : > { %v1548_v25 = vpop.xlane.xlu1 %1547 }
 0x338   : > { %v4344_v43 = vpop.xlane.xlu0 %1550 }
 0x33c   : > { %v4346_v33 = vpop.xlane.xlu1 %1553 }
 0x340   : > { %v4348_v27 = vpop.xlane.xlu0 %1556 }
 0x344   : > { %v4350_v30 = vpop.xlane.xlu1 %1559 }
 0x348   : > { %v4352_v11 = vpop.xlane.xlu0 %1562 }
 0x34c   : > { %v4354_v35 = vpop.xlane.xlu1 %1565 }
 0x350   : > { %v4356_v0 = vpop.xlane.xlu0 %1568 }
 0x354   : > { %v4358_v60 = vpop.xlane.xlu1 %1571  ;;  %v1575_v22 = vpop.xlane.xlu0 %1574 }
 0x355   : > { %3023 = vrcp.f32 %v1575_v22 }
 0x358   : > { %v1578_v47 = vpop.xlane.xlu1 %1577  ;;  %v1581_v59 = vpop.xlane.xlu0 %1580 }
 0x359   : > { %3025 = vrcp.f32 %v1578_v47 }
 0x35a   : > { %3027 = vrcp.f32 %v1533_v13 }
 0x35b   : > { %3029 = vrcp.f32 %v1536_v18 }
 0x35c   : > { %v1584_v10 = vpop.xlane.xlu1 %1583  ;;  %v1587_v39 = vpop.xlane.xlu0 %1586 }
 0x35d   : > { %3031 = vrcp.f32 %v1584_v10 }
 0x35e   : > { %v2554_v53 = vpop.f32.mrb[0].mxu0  ;;  %3033 = vrcp.f32 %v1581_v59 }
 0x35f   : > { %v2044_v9 = vmul.f32 %v3020_v14, %v2554_v53  ;;  %v1739_v21 = vpop.f32.mrb[1].mxu0  ;;  %v3024_v42 = vpop.eup %3023  ;;  %3035 = vrcp.f32 %v1539_v32 }
 0x360   : > { %v2043_v52 = vmul.f32 %v3022_v16, %v1739_v21  ;;  %v1590_v45 = vpop.xlane.xlu1 %1589  ;;  %3037 = vrcp.f32 %v1542_v54  ;;  %v1593_v7 = vpop.xlane.xlu0 %1592 }
 0x361   : > { %2076 = vst.msk [vmem:[%s3308_s6 + $0x8] sm:$0xff] %vm1332_vm1, %v2044_v9  ;;  %3039 = vrcp.f32 %v1590_v45 }
 0x362   : > { %2075 = vst.msk [vmem:[%s3308_s6] sm:$0xff] %vm1332_vm1, %v2043_v52  ;;  %v2582_v23 = vpop.f32.mrb[0].mxu1  ;;  %3041 = vrcp.f32 %v1587_v39 }
 0x363   : > { %v3026_v1 = vpop.eup %3025  ;;  %v1932_v37 = vpop.f32.mrb[1].mxu1  ;;  %3043 = vrcp.f32 %v1548_v25 }
 0x364   : > { %v2060_v58 = vmul.f32 %v3026_v1, %v2582_v23  ;;  %v2059_v49 = vmul.f32 %v3024_v42, %v1932_v37  ;;  %v3028_v40 = vpop.eup %3027  ;;  %v1596_v28 = vpop.xlane.xlu1 %1595 }
 0x365   : > { %v3030_v29 = vpop.eup %3029  ;;  %3045 = vrcp.f32 %v1596_v28  ;;  %v1599_v44 = vpop.xlane.xlu0 %1598 }
 0x366   : > { %2092 = vst.msk [vmem:[%s3308_s6 + $0x88] sm:$0xff] %vm1332_vm1, %v2060_v58  ;;  %2091 = vst.msk [vmem:[%s3308_s6 + $0x80] sm:$0xff] %vm1332_vm1, %v2059_v49  ;;  %3047 = vrcp.f32 %v1593_v7 }
 0x367   : > { %v3032_v55 = vpop.eup %3031  ;;  %3049 = vrcp.f32 %v4342_v31 }
 0x368   : > { %v2585_v34 = vpop.f32.mrb[2].mxu1  ;;  %v3034_v56 = vpop.eup %3033  ;;  %3051 = vrcp.f32 %v4346_v33 }
 0x369   : > { %v2557_v62 = vpop.f32.mrb[2].mxu0  ;;  %v2062_v2 = vmul.f32 %v3032_v55, %v2585_v34  ;;  %v1942_v12 = vpop.f32.mrb[3].mxu1 }
 0x36a   : > { %v2046_v36 = vmul.f32 %v3030_v29, %v2557_v62  ;;  %v1749_v5 = vpop.f32.mrb[3].mxu0  ;;  %v2061_v48 = vmul.f32 %v3034_v56, %v1942_v12  ;;  %v3036_v17 = vpop.eup %3035 }
 0x36b   : > { %v2045_v20 = vmul.f32 %v3028_v40, %v1749_v5  ;;  %2094 = vst.msk [vmem:[%s3308_s6 + $0x98] sm:$0xff] %vm1332_vm1, %v2062_v2  ;;  %v3038_v38 = vpop.eup %3037  ;;  %v1602_v46 = vpop.xlane.xlu1 %1601 }
 0x36c   : > { %2078 = vst.msk [vmem:[%s3308_s6 + $0x18] sm:$0xff] %vm1332_vm1, %v2046_v36  ;;  %2093 = vst.msk [vmem:[%s3308_s6 + $0x90] sm:$0xff] %vm1332_vm1, %v2061_v48  ;;  %v3040_v4 = vpop.eup %3039  ;;  %3053 = vrcp.f32 %v1602_v46  ;;  %v1605_v10 = vpop.xlane.xlu0 %1604 }
 0x36d   : > { %2077 = vst.msk [vmem:[%s3308_s6 + $0x10] sm:$0xff] %vm1332_vm1, %v2045_v20  ;;  %v3042_v57 = vpop.eup %3041  ;;  %3055 = vrcp.f32 %v1599_v44 }
 0x36e   : > { %v3044_v41 = vpop.eup %3043  ;;  %3057 = vrcp.f32 %v4344_v43 }
 0x36f   : > { %v3046_v26 = vpop.eup %3045  ;;  %v1608_v22 = vpop.xlane.xlu1 %1607  ;;  %3059 = vrcp.f32 %v4350_v30 }
 0x370   : > { %v2588_v8 = vpop.f32.mrb[4].mxu1  ;;  %v3048_v50 = vpop.eup %3047  ;;  %3061 = vrcp.f32 %v1608_v22 }
 0x371   : > { %v2560_v24 = vpop.f32.mrb[4].mxu0  ;;  %v2064_v6 = vmul.f32 %v3040_v4, %v2588_v8  ;;  %v1952_v3 = vpop.f32.mrb[5].mxu1  ;;  %3063 = vrcp.f32 %v1605_v10 }
 0x372   : > { %v2048_v63 = vmul.f32 %v3038_v38, %v2560_v24  ;;  %v1759_v61 = vpop.f32.mrb[5].mxu0  ;;  %v2063_v51 = vmul.f32 %v3042_v57, %v1952_v3  ;;  %v3050_v54 = vpop.eup %3049  ;;  %3065 = vrcp.f32 %v4348_v27 }
 0x373   : > { %v2047_v15 = vmul.f32 %v3036_v17, %v1759_v61  ;;  %2096 = vst.msk [vmem:[%s3308_s6 + $0xa8] sm:$0xff] %vm1332_vm1, %v2064_v6  ;;  %v3052_v43 = vpop.eup %3051  ;;  %v1614_v1 = vpop.xlane.xlu1 %1613  ;;  %3067 = vrcp.f32 %v4354_v35 }
 0x374   : > { %2080 = vst.msk [vmem:[%s3308_s6 + $0x28] sm:$0xff] %vm1332_vm1, %v2048_v63  ;;  %2095 = vst.msk [vmem:[%s3308_s6 + $0xa0] sm:$0xff] %vm1332_vm1, %v2063_v51  ;;  %v1611_v45 = vpop.xlane.xlu0 %1610  ;;  %3069 = vrcp.f32 %v1614_v1 }
 0x375   : > { %2079 = vst.msk [vmem:[%s3308_s6 + $0x20] sm:$0xff] %vm1332_vm1, %v2047_v15  ;;  %3071 = vrcp.f32 %v1611_v45 }
 0x376   : > { %v3054_v59 = vpop.eup %3053  ;;  %3073 = vrcp.f32 %v4352_v11 }
 0x377   : > { %v3056_v53 = vpop.eup %3055  ;;  %v1620_v36 = vpop.xlane.xlu1 %1619  ;;  %3075 = vrcp.f32 %v4358_v60 }
 0x378   : > { %v2591_v19 = vpop.f32.mrb[6].mxu1  ;;  %v3058_v52 = vpop.eup %3057  ;;  %3077 = vrcp.f32 %v1620_v36 }
 0x379   : > { %v2563_v13 = vpop.f32.mrb[6].mxu0  ;;  %v2066_v18 = vmul.f32 %v3046_v26, %v2591_v19  ;;  %v1962_v32 = vpop.f32.mrb[7].mxu1  ;;  %v2209_v19 = vld [vmem:[%s3308_s6] sm:$0xff] (%p3207_p6) }
 0x37a   : > { %v2050_v31 = vmul.f32 %v3044_v41, %v2563_v13  ;;  %v1769_v25 = vpop.f32.mrb[7].mxu0  ;;  %v2065_v33 = vmul.f32 %v3048_v50, %v1962_v32  ;;  %v3060_v27 = vpop.eup %3059  ;;  %v2211_v50 = vld [vmem:[%s3308_s6 + $0x8] sm:$0xff] (%p3207_p6)  ;;  %v2213_v13 = vld [vmem:[%s3308_s6 + $0x10] sm:$0xff] (%p3207_p6)  ;;  %2210 = vst [vmem:[%s4449_s11] sm:$0xff] (%p3207_p6), %v2209_v19 }
 0x37b   : > { %2098 = vst.msk [vmem:[%s3308_s6 + $0xb8] sm:$0xff] %vm1332_vm1, %v2066_v18  ;;  %v2049_v47 = vmul.f32 %v3050_v54, %v1769_v25  ;;  %v3062_v58 = vpop.eup %3061  ;;  %v1617_v5 = vpop.xlane.xlu0 %1616  ;;  %v2215_v18 = vld [vmem:[%s3308_s6 + $0x18] sm:$0xff] (%p3207_p6)  ;;  %v2219_v54 = vld [vmem:[%s3308_s6 + $0x28] sm:$0xff] (%p3207_p6)  ;;  %2212 = vst [vmem:[%s4449_s11 + $0x8] sm:$0xff] (%p3207_p6), %v2211_v50 }
 0x37c   : > { %2082 = vst.msk [vmem:[%s3308_s6 + $0x38] sm:$0xff] %vm1332_vm1, %v2050_v31  ;;  %2097 = vst.msk [vmem:[%s3308_s6 + $0xb0] sm:$0xff] %vm1332_vm1, %v2065_v33  ;;  %v3064_v39 = vpop.eup %3063  ;;  %3079 = vrcp.f32 %v1617_v5  ;;  %v2217_v32 = vld [vmem:[%s3308_s6 + $0x20] sm:$0xff] (%p3207_p6) }
 0x37d   : > { %2081 = vst.msk [vmem:[%s3308_s6 + $0x30] sm:$0xff] %vm1332_vm1, %v2049_v47  ;;  %v3066_v62 = vpop.eup %3065  ;;  %3081 = vrcp.f32 %v4356_v0  ;;  %2214 = vst [vmem:[%s4449_s11 + $0x10] sm:$0xff] (%p3207_p6), %v2213_v13 }
 0x37e   : > { %v3068_v11 = vpop.eup %3067  ;;  %2216 = vst [vmem:[%s4449_s11 + $0x18] sm:$0xff] (%p3207_p6), %v2215_v18  ;;  %2218 = vst [vmem:[%s4449_s11 + $0x20] sm:$0xff] (%p3207_p6), %v2217_v32 }
 0x37f   : > { %v3070_v12 = vpop.eup %3069  ;;  %2220 = vst [vmem:[%s4449_s11 + $0x28] sm:$0xff] (%p3207_p6), %v2219_v54 }
 0x380   : > { %v2594_v14 = vpop.f32.mrb[8].mxu1  ;;  %v3072_v20 = vpop.eup %3071 }
 0x381   : > { %v2566_v16 = vpop.f32.mrb[8].mxu0  ;;  %v2068_v9 = vmul.f32 %v3054_v59, %v2594_v14  ;;  %v1972_v21 = vpop.f32.mrb[9].mxu1 }
 0x382   : > { %v2052_v42 = vmul.f32 %v3052_v43, %v2566_v16  ;;  %v1779_v30 = vpop.f32.mrb[9].mxu0  ;;  %v2067_v23 = vmul.f32 %v3056_v53, %v1972_v21  ;;  %v3074_v38 = vpop.eup %3073  ;;  %v2241_v16 = vld [vmem:[%s3308_s6 + $0x80] sm:$0xff] (%p3207_p6)  ;;  %v2245_v21 = vld [vmem:[%s3308_s6 + $0x90] sm:$0xff] (%p3207_p6)  ;;  %v2255_v1 = vld [vmem:[%s3308_s6 + $0xb8] sm:$0xff] (%p3207_p6) }
 0x383   : > { %2100 = vst.msk [vmem:[%s3308_s6 + $0xc8] sm:$0xff] %vm1332_vm1, %v2068_v9  ;;  %v2051_v37 = vmul.f32 %v3058_v52, %v1779_v30  ;;  %v3076_v0 = vpop.eup %3075  ;;  %v2223_v25 = vld [vmem:[%s3308_s6 + $0x38] sm:$0xff] (%p3207_p6)  ;;  %v2243_v9 = vld [vmem:[%s3308_s6 + $0x88] sm:$0xff] (%p3207_p6)  ;;  %2242 = vst [vmem:[%s4449_s11 + $0x100] sm:$0xff] (%p3207_p6), %v2241_v16 }
 0x384   : > { %2084 = vst.msk [vmem:[%s3308_s6 + $0x48] sm:$0xff] %vm1332_vm1, %v2052_v42  ;;  %2099 = vst.msk [vmem:[%s3308_s6 + $0xc0] sm:$0xff] %vm1332_vm1, %v2067_v23  ;;  %v3078_v57 = vpop.eup %3077  ;;  %v2221_v31 = vld [vmem:[%s3308_s6 + $0x30] sm:$0xff] (%p3207_p6)  ;;  %v2247_v52 = vld [vmem:[%s3308_s6 + $0x98] sm:$0xff] (%p3207_p6) }
 0x385   : > { %2083 = vst.msk [vmem:[%s3308_s6 + $0x40] sm:$0xff] %vm1332_vm1, %v2051_v37  ;;  %2222 = vst [vmem:[%s4449_s11 + $0x30] sm:$0xff] (%p3207_p6), %v2221_v31  ;;  %v2249_v42 = vld [vmem:[%s3308_s6 + $0xa0] sm:$0xff] (%p3207_p6)  ;;  %v2251_v30 = vld [vmem:[%s3308_s6 + $0xa8] sm:$0xff] (%p3207_p6) }
 0x386   : > { %v3080_v6 = vpop.eup %3079  ;;  %2224 = vst [vmem:[%s4449_s11 + $0x38] sm:$0xff] (%p3207_p6), %v2223_v25  ;;  %2244 = vst [vmem:[%s4449_s11 + $0x108] sm:$0xff] (%p3207_p6), %v2243_v9  ;;  %v2253_v23 = vld [vmem:[%s3308_s6 + $0xb0] sm:$0xff] (%p3207_p6) }
 0x387   : > { %v3082_v15 = vpop.eup %3081  ;;  %2246 = vst [vmem:[%s4449_s11 + $0x110] sm:$0xff] (%p3207_p6), %v2245_v21  ;;  %2248 = vst [vmem:[%s4449_s11 + $0x118] sm:$0xff] (%p3207_p6), %v2247_v52 }
 0x388   : > { %v2597_v49 = vpop.f32.mrb[10].mxu1  ;;  %2250 = vst [vmem:[%s4449_s11 + $0x120] sm:$0xff] (%p3207_p6), %v2249_v42  ;;  %2252 = vst [vmem:[%s4449_s11 + $0x128] sm:$0xff] (%p3207_p6), %v2251_v30 }
 0x389   : > { %v2569_v40 = vpop.f32.mrb[10].mxu0  ;;  %v2070_v29 = vmul.f32 %v3062_v58, %v2597_v49  ;;  %v1982_v55 = vpop.f32.mrb[11].mxu1  ;;  %2254 = vst [vmem:[%s4449_s11 + $0x130] sm:$0xff] (%p3207_p6), %v2253_v23  ;;  %2256 = vst [vmem:[%s4449_s11 + $0x138] sm:$0xff] (%p3207_p6), %v2255_v1 }
 0x38a   : > { %v2054_v34 = vmul.f32 %v3060_v27, %v2569_v40  ;;  %v1789_v35 = vpop.f32.mrb[11].mxu0  ;;  %v2069_v56 = vmul.f32 %v3064_v39, %v1982_v55  ;;  %v2259_v45 = vld [vmem:[%s3308_s6 + $0xc8] sm:$0xff] (%p3207_p6) }
 0x38b   : > { %2102 = vst.msk [vmem:[%s3308_s6 + $0xd8] sm:$0xff] %vm1332_vm1, %v2070_v29  ;;  %v2053_v2 = vmul.f32 %v3066_v62, %v1789_v35  ;;  %v2227_v22 = vld [vmem:[%s3308_s6 + $0x48] sm:$0xff] (%p3207_p6)  ;;  %v2257_v37 = vld [vmem:[%s3308_s6 + $0xc0] sm:$0xff] (%p3207_p6)  ;;  %2260 = vst [vmem:[%s4449_s11 + $0x148] sm:$0xff] (%p3207_p6), %v2259_v45 }
 0x38c   : > { %2086 = vst.msk [vmem:[%s3308_s6 + $0x58] sm:$0xff] %vm1332_vm1, %v2054_v34  ;;  %2101 = vst.msk [vmem:[%s3308_s6 + $0xd0] sm:$0xff] %vm1332_vm1, %v2069_v56  ;;  %v2225_v33 = vld [vmem:[%s3308_s6 + $0x40] sm:$0xff] (%p3207_p6) }
 0x38d   : > { %2085 = vst.msk [vmem:[%s3308_s6 + $0x50] sm:$0xff] %vm1332_vm1, %v2053_v2  ;;  %2226 = vst [vmem:[%s4449_s11 + $0x40] sm:$0xff] (%p3207_p6), %v2225_v33 }
 0x38e   : > { %2228 = vst [vmem:[%s4449_s11 + $0x48] sm:$0xff] (%p3207_p6), %v2227_v22  ;;  %2258 = vst [vmem:[%s4449_s11 + $0x140] sm:$0xff] (%p3207_p6), %v2257_v37 }
 0x390   : > { %v2600_v28 = vpop.f32.mrb[12].mxu1 }
 0x391   : > { %v2572_v48 = vpop.f32.mrb[12].mxu0  ;;  %v2072_v7 = vmul.f32 %v3070_v12, %v2600_v28  ;;  %v1992_v17 = vpop.f32.mrb[13].mxu1 }
 0x392   : > { %v2056_v4 = vmul.f32 %v3068_v11, %v2572_v48  ;;  %v1799_v60 = vpop.f32.mrb[13].mxu0  ;;  %v2071_v24 = vmul.f32 %v3072_v20, %v1992_v17  ;;  %v2263_v58 = vld [vmem:[%s3308_s6 + $0xd8] sm:$0xff] (%p3207_p6) }
 0x393   : > { %2104 = vst.msk [vmem:[%s3308_s6 + $0xe8] sm:$0xff] %vm1332_vm1, %v2072_v7  ;;  %v2055_v8 = vmul.f32 %v3074_v38, %v1799_v60  ;;  %v2231_v10 = vld [vmem:[%s3308_s6 + $0x58] sm:$0xff] (%p3207_p6)  ;;  %v2261_v27 = vld [vmem:[%s3308_s6 + $0xd0] sm:$0xff] (%p3207_p6)  ;;  %2264 = vst [vmem:[%s4449_s11 + $0x158] sm:$0xff] (%p3207_p6), %v2263_v58 }
 0x394   : > { %2088 = vst.msk [vmem:[%s3308_s6 + $0x68] sm:$0xff] %vm1332_vm1, %v2056_v4  ;;  %2103 = vst.msk [vmem:[%s3308_s6 + $0xe0] sm:$0xff] %vm1332_vm1, %v2071_v24  ;;  %v2229_v47 = vld [vmem:[%s3308_s6 + $0x50] sm:$0xff] (%p3207_p6) }
 0x395   : > { %2087 = vst.msk [vmem:[%s3308_s6 + $0x60] sm:$0xff] %vm1332_vm1, %v2055_v8  ;;  %2230 = vst [vmem:[%s4449_s11 + $0x50] sm:$0xff] (%p3207_p6), %v2229_v47 }
 0x396   : > { %2232 = vst [vmem:[%s4449_s11 + $0x58] sm:$0xff] (%p3207_p6), %v2231_v10  ;;  %2262 = vst [vmem:[%s4449_s11 + $0x150] sm:$0xff] (%p3207_p6), %v2261_v27 }
 0x397   : > { %2113 = sbr.rel (!%p3207_p6) target bundleno = 934 (0x3a6), region = 78 }
 0x398   : > { %v2603_v63 = vpop.f32.mrb[14].mxu1 }
 0x399   : > { %v2575_v61 = vpop.f32.mrb[14].mxu0  ;;  %v2074_v3 = vmul.f32 %v3078_v57, %v2603_v63  ;;  %v2002_v46 = vpop.f32.mrb[15].mxu1 }
 0x39a   : > { %v2058_v51 = vmul.f32 %v3076_v0, %v2575_v61  ;;  %v1809_v44 = vpop.f32.mrb[15].mxu0  ;;  %v2073_v41 = vmul.f32 %v3080_v6, %v2002_v46  ;;  %v2267_v39 = vld [vmem:[%s3308_s6 + $0xe8] sm:$0xff] (%p3207_p6) }
 0x39b   : > { %2106 = vst.msk [vmem:[%s3308_s6 + $0xf8] sm:$0xff] %vm1332_vm1, %v2074_v3  ;;  %v2057_v26 = vmul.f32 %v3082_v15, %v1809_v44  ;;  %v2235_v59 = vld [vmem:[%s3308_s6 + $0x68] sm:$0xff] (%p3207_p6)  ;;  %v2265_v49 = vld [vmem:[%s3308_s6 + $0xe0] sm:$0xff] (%p3207_p6)  ;;  %2268 = vst [vmem:[%s4449_s11 + $0x168] sm:$0xff] (%p3207_p6), %v2267_v39 }
 0x39c   : > { %2090 = vst.msk [vmem:[%s3308_s6 + $0x78] sm:$0xff] %vm1332_vm1, %v2058_v51  ;;  %2105 = vst.msk [vmem:[%s3308_s6 + $0xf0] sm:$0xff] %vm1332_vm1, %v2073_v41  ;;  %v2233_v43 = vld [vmem:[%s3308_s6 + $0x60] sm:$0xff] (%p3207_p6) }
 0x39d   : > { %2089 = vst.msk [vmem:[%s3308_s6 + $0x70] sm:$0xff] %vm1332_vm1, %v2057_v26  ;;  %2234 = vst [vmem:[%s4449_s11 + $0x60] sm:$0xff] (%p3207_p6), %v2233_v43 }
 0x39e   : > { %2236 = vst [vmem:[%s4449_s11 + $0x68] sm:$0xff] %v2235_v59  ;;  %2266 = vst [vmem:[%s4449_s11 + $0x160] sm:$0xff] %v2265_v49 }
 0x3a2   : > { %v2271_v29 = vld [vmem:[%s3308_s6 + $0xf8] sm:$0xff] }
 0x3a3   : > { %v2239_v53 = vld [vmem:[%s3308_s6 + $0x78] sm:$0xff]  ;;  %v2269_v40 = vld [vmem:[%s3308_s6 + $0xf0] sm:$0xff]  ;;  %2272 = vst [vmem:[%s4449_s11 + $0x178] sm:$0xff] %v2271_v29 }
 0x3a4   : > { %v2237_v14 = vld [vmem:[%s3308_s6 + $0x70] sm:$0xff]  ;;  %2240 = vst [vmem:[%s4449_s11 + $0x78] sm:$0xff] %v2239_v53  ;;  %2270 = vst [vmem:[%s4449_s11 + $0x170] sm:$0xff] %v2269_v40 }
 0x3a5   : > { %2238 = vst [vmem:[%s4449_s11 + $0x70] sm:$0xff] %v2237_v14 }
 0x3a6 PF: > { %s13_s18 = sadd.s32 1, %s3137_s18   ;;  %s4619_s12 = smov %s3117_s13 }
 0x3a7   : > { %p10_p0 = scmp.ge.s32.totalorder %s13_s18, 6   ;;  %s4620_s13 = smov %s3215_s27 }
 0x3a8   : > { %s4621_s14 = smov %s3129_s16  ;;  %s4622_s15 = smov %s3133_s17 }
 0x3a9   : > { %s4623_s16 = smov %s4626_s19  ;;  %s4624_s17 = smov %s4630_s20 }
 0x3aa   :  { %12 = sbr.rel (!%p10_p0) target bundleno = 4 (0x4), region = 153 }

</bundles_post_ra>
